<compile_context>
chip_gen: v5e
topology: v5e:2x2
jax: 0.10.0
libtpu: 0.0.40
codegen_flags: <defaults>
</compile_context>

<pallas_src>
import functools
import math

import jax
import jax.numpy as jnp
from jax.experimental import pallas as pl
from jax.experimental.pallas import tpu as pltpu

# ----------------------------------------------------------------------------
# Synthetic "w2v_model" dimensions (small stand-in for AV-HuBERT)
# ----------------------------------------------------------------------------
HIDDEN = 32
HEADS = 4
HEAD_DIM = HIDDEN // HEADS
FFN = 64
N_LAYERS = 2
C_FEAT = 32
CONV1_K, CONV1_S = 10, 5
CONV2_K, CONV2_S = 4, 2
LN_EPS = 1e-5

# TODO(synk): make generation-aware (v5e/v6e can go ~100 MiB, v7x ~48-56 MiB)
# once real-HuBERT-sized weight blocks are N/K-tiled; 32 MiB is safe everywhere
# and far above what this toy problem needs.
VMEM_LIMIT = 32 * 1024 * 1024


# ----------------------------------------------------------------------------
# Small helpers (used both in-kernel and by the pure-JAX reference)
# ----------------------------------------------------------------------------
def _gelu_tanh(x):
    # TODO(synk): fairseq HuBERT uses exact erf-GELU; tanh approximation here.
    return 0.5 * x * (1.0 + jnp.tanh(0.7978845608028654 * (x + 0.044715 * x * x * x)))


def _layernorm(y, g, b, eps):
    mean = jnp.mean(y, axis=-1, keepdims=True)
    var = jnp.mean(jnp.square(y - mean), axis=-1, keepdims=True)
    return (y - mean) * jax.lax.rsqrt(var + eps) * g + b


# ----------------------------------------------------------------------------
# One fused kernel: whole encoder forward for a single batch element
# ----------------------------------------------------------------------------
def _encoder_kernel(*refs, n_layers, n_heads, head_dim, hidden, c_feat,
                    t_conv1, t_out, eps):
    f32, bf16 = jnp.float32, jnp.bfloat16

    x_ref = refs[0]                                   # (rows, 2*CONV1_S) packed raw wave
    c1w, c1b, c2w, c2b, feg, feb, pw, pb = refs[1:9]  # feature-extractor params
    layer_refs = refs[9:-1]                           # 12 refs per transformer layer
    o_ref = refs[-1]                                  # (t_out, hidden)

    n_half = t_conv1 // 2                             # even/odd frame count (stride-2 packing)

    # ---- conv1 (k=10, s=5, c_in=1) as two lane-dense matmuls --------------
    xp = x_ref[...].astype(f32)                       # row j = raw[10j : 10j+10]
    b1 = c1b[...].astype(f32)
    even_in = xp[0:n_half, :]                                               # frames 2j
    odd_in = jnp.concatenate([xp[0:n_half, CONV1_S:],                       # frames 2j+1
                              xp[1:n_half + 1, :CONV1_S]], axis=1)
    h_even = _gelu_tanh(jnp.dot(even_in.astype(bf16), c1w[...],
                                preferred_element_type=f32) + b1)
    h_odd = _gelu_tanh(jnp.dot(odd_in.astype(bf16), c1w[...],
                               preferred_element_type=f32) + b1)
    # stride-2 packed conv1 output: row j = [frame 2j | frame 2j+1]
    h1 = jnp.concatenate([h_even, h_odd], axis=1)                           # (n_half, 2*c_feat)

    # ---- conv2 (k=4, s=2) as ONE matmul on an in-VMEM im2col --------------
    taps = [h1[kk // 2: kk // 2 + t_out, (kk % 2) * c_feat:(kk % 2 + 1) * c_feat]
            for kk in range(CONV2_K)]                                       # tap kk = frame 2u+kk
    im2 = jnp.concatenate(taps, axis=1)                                     # (t_out, K2*c_feat)
    h2 = _gelu_tanh(jnp.dot(im2.astype(bf16), c2w[...],
                            preferred_element_type=f32) + c2b[...].astype(f32))

    # ---- feature LayerNorm + post-extract projection ----------------------
    x = _layernorm(h2, feg[...].astype(f32), feb[...].astype(f32), eps)
    x = jnp.dot(x.astype(bf16), pw[...], preferred_element_type=f32) + pb[...].astype(f32)

    # ---- post-LN transformer layers (all intermediates stay in vregs) -----
    scale = 1.0 / math.sqrt(head_dim)
    for li in range(n_layers):
        (wqkv, bqkv, wo, bo, g1, be1, fw1, fb1, fw2, fb2, g2, be2) = \
            layer_refs[12 * li:12 * (li + 1)]

        # fused Q|K|V projection: one (H, 3H) matmul
        qkv = jnp.dot(x.astype(bf16), wqkv[...],
                      preferred_element_type=f32) + bqkv[...].astype(f32)   # (T, 3H)

        # Multi-head attention. Heads are a small static unrolled loop; since
        # the whole layer is fused, the attention result never touches an
        # output ref (no masked 8-lane stores) — it is concatenated in-register
        # and fed straight into the out-projection matmul.
        # TODO(synk): for real HuBERT T (500-1500) switch to a flash-style
        # online-softmax kernel with a q-tile grid axis and KV loop (v7x VMEM).
        outs = []
        for h in range(n_heads):
            q = qkv[:, h * head_dim:(h + 1) * head_dim]
            k = qkv[:, hidden + h * head_dim:hidden + (h + 1) * head_dim]
            v = qkv[:, 2 * hidden + h * head_dim:2 * hidden + (h + 1) * head_dim]
            s = jax.lax.dot_general(
                q.astype(bf16), k.astype(bf16),
                dimension_numbers=(((1,), (1,)), ((), ())),
                preferred_element_type=f32) * scale                        # (T, T)
            m = jnp.max(s, axis=-1, keepdims=True)
            p = jnp.exp(s - m)
            p = p * pl.reciprocal(jnp.sum(p, axis=-1, keepdims=True), approx=True)
            outs.append(jnp.dot(p.astype(bf16), v.astype(bf16),
                                preferred_element_type=f32))               # (T, dh)
        attn = jnp.concatenate(outs, axis=-1)                              # (T, H) lane-dense

        # out-projection + residual + LN1
        y = jnp.dot(attn.astype(bf16), wo[...],
                    preferred_element_type=f32) + bo[...].astype(f32) + x
        x = _layernorm(y, g1[...].astype(f32), be1[...].astype(f32), eps)

        # fc1 + GELU + fc2 + residual + LN2 (FFN hidden never leaves vregs)
        # TODO(synk): for real dims (H=1024, FFN=4096) tile the weights over N
        # and add a K reduction grid axis with a VMEM accumulator (v7x VMEM).
        hmid = _gelu_tanh(jnp.dot(x.astype(bf16), fw1[...],
                                  preferred_element_type=f32) + fb1[...].astype(f32))
        y = jnp.dot(hmid.astype(bf16), fw2[...],
                    preferred_element_type=f32) + fb2[...].astype(f32) + x
        x = _layernorm(y, g2[...].astype(f32), be2[...].astype(f32), eps)

    o_ref[...] = x.astype(o_ref.dtype)


# ----------------------------------------------------------------------------
# Wrapper: single fused pallas_call for the whole forward pass
# ----------------------------------------------------------------------------
def extract_features(params, source, padding_mask=None):
    """source: (B, T_raw) raw waveform -> (features (B, T', H), padding_mask)."""
    B, t_raw = source.shape
    t1 = (t_raw - CONV1_K) // CONV1_S + 1
    t2 = (t1 - CONV2_K) // CONV2_S + 1
    # TODO(synk): support odd conv1 frame counts / arbitrary raw lengths
    # (pad + mask) instead of asserting.
    assert t1 % 2 == 0, "stride-2 packing assumes an even conv1 frame count"

    # Stride-pack the raw wave: row j = raw[10j : 10j+10]; only reshape, no im2col.
    rows = t1 // 2 + 1
    t_pad = rows * 2 * CONV1_S
    x = source
    if t_pad > t_raw:
        x = jnp.pad(x, ((0, 0), (0, t_pad - t_raw)))
    else:
        x = x[:, :t_pad]
    xp = x.reshape(B, rows, 2 * CONV1_S)

    weights = [
        params["conv1_w"], params["conv1_b"], params["conv2_w"], params["conv2_b"],
        params["fe_ln_g"], params["fe_ln_b"], params["proj_w"], params["proj_b"],
    ]
    for lp in params["layers"]:
        weights += [lp["wqkv"], lp["bqkv"], lp["wo"], lp["bo"],
                    lp["ln1_g"], lp["ln1_b"], lp["fc1_w"], lp["fc1_b"],
                    lp["fc2_w"], lp["fc2_b"], lp["ln2_g"], lp["ln2_b"]]

    kernel = functools.partial(
        _encoder_kernel,
        n_layers=len(params["layers"]), n_heads=HEADS, head_dim=HEAD_DIM,
        hidden=HIDDEN, c_feat=C_FEAT, t_conv1=t1, t_out=t2, eps=LN_EPS)

    out = pl.pallas_call(
        kernel,
        out_shape=jax.ShapeDtypeStruct((B, t2, HIDDEN), jnp.float32),
        grid=(B,),
        in_specs=[pl.BlockSpec((None, rows, 2 * CONV1_S), lambda b: (b, 0, 0))]
                 + [pl.BlockSpec(w.shape, lambda b: (0, 0)) for w in weights],
        out_specs=pl.BlockSpec((None, t2, HIDDEN), lambda b: (b, 0, 0)),
        compiler_params=pltpu.CompilerParams(
            dimension_semantics=("parallel",),
            vmem_limit_bytes=VMEM_LIMIT),
    )(xp, *weights)

    # TODO(synk): real AV-HuBERT downsamples padding_mask through the strided
    # convs and applies it as an attention mask; passed through unchanged here.
    return out, padding_mask


# ----------------------------------------------------------------------------
# Parameter init (matmul weights pre-cast to bf16; biases/LN stay f32)
# ----------------------------------------------------------------------------
def init_params(key):
    keys = iter(jax.random.split(key, 64))

    def dense(shape):
        return (jax.random.normal(next(keys), shape, jnp.float32) * 0.02).astype(jnp.bfloat16)

    def zeros(n):
        return jnp.zeros((1, n), jnp.float32)

    def ones(n):
        return jnp.ones((1, n), jnp.float32)

    p = {
        "conv1_w": dense((CONV1_K * 1, C_FEAT)), "conv1_b": zeros(C_FEAT),
        "conv2_w": dense((CONV2_K * C_FEAT, C_FEAT)), "conv2_b": zeros(C_FEAT),
        "fe_ln_g": ones(C_FEAT), "fe_ln_b": zeros(C_FEAT),
        "proj_w": dense((C_FEAT, HIDDEN)), "proj_b": zeros(HIDDEN),
        "layers": [],
    }
    for _ in range(N_LAYERS):
        wq, wk, wv = (dense((HIDDEN, HIDDEN)) for _ in range(3))
        p["layers"].append({
            "wqkv": jnp.concatenate([wq, wk, wv], axis=1),   # fused QKV projection
            "bqkv": zeros(3 * HIDDEN),
            "wo": dense((HIDDEN, HIDDEN)), "bo": zeros(HIDDEN),
            "ln1_g": ones(HIDDEN), "ln1_b": zeros(HIDDEN),
            "fc1_w": dense((HIDDEN, FFN)), "fc1_b": zeros(FFN),
            "fc2_w": dense((FFN, HIDDEN)), "fc2_b": zeros(HIDDEN),
            "ln2_g": ones(HIDDEN), "ln2_b": zeros(HIDDEN),
        })
    return p


# ----------------------------------------------------------------------------
# Pure-JAX reference (same math: bf16 matmul operands, f32 accumulation)
# ----------------------------------------------------------------------------
def ref_extract_features(params, source):
    f32, bf16 = jnp.float32, jnp.bfloat16

    def mm(a, w):
        return jnp.dot(a.astype(bf16), w, preferred_element_type=f32)

    B, t_raw = source.shape
    t1 = (t_raw - CONV1_K) // CONV1_S + 1
    idx1 = jnp.arange(t1)[:, None] * CONV1_S + jnp.arange(CONV1_K)[None, :]
    win1 = source[:, idx1].reshape(B * t1, CONV1_K)
    h1 = _gelu_tanh(mm(win1, params["conv1_w"]) + params["conv1_b"]).reshape(B, t1, C_FEAT)

    t2 = (t1 - CONV2_K) // CONV2_S + 1
    idx2 = jnp.arange(t2)[:, None] * CONV2_S + jnp.arange(CONV2_K)[None, :]
    win2 = h1[:, idx2, :].reshape(B * t2, CONV2_K * C_FEAT)
    h2 = _gelu_tanh(mm(win2, params["conv2_w"]) + params["conv2_b"])

    x = _layernorm(h2, params["fe_ln_g"], params["fe_ln_b"], LN_EPS)
    x = mm(x, params["proj_w"]) + params["proj_b"]

    scale = 1.0 / math.sqrt(HEAD_DIM)
    for lp in params["layers"]:
        qkv = (mm(x, lp["wqkv"]) + lp["bqkv"]).reshape(B, t2, 3, HEADS, HEAD_DIM)
        q = qkv[:, :, 0].transpose(0, 2, 1, 3)
        k = qkv[:, :, 1].transpose(0, 2, 1, 3)
        v = qkv[:, :, 2].transpose(0, 2, 1, 3)
        s = jnp.einsum("bhtd,bhsd->bhts", q.astype(bf16), k.astype(bf16),
                       preferred_element_type=f32) * scale
        p = jax.nn.softmax(s, axis=-1)
        o = jnp.einsum("bhts,bhsd->bhtd", p.astype(bf16), v.astype(bf16),
                       preferred_element_type=f32)
        attn = o.transpose(0, 2, 1, 3).reshape(B * t2, HIDDEN)
        x = _layernorm(mm(attn, lp["wo"]) + lp["bo"] + x, lp["ln1_g"], lp["ln1_b"], LN_EPS)
        h = _gelu_tanh(mm(x, lp["fc1_w"]) + lp["fc1_b"])
        x = _layernorm(mm(h, lp["fc2_w"]) + lp["fc2_b"] + x, lp["ln2_g"], lp["ln2_b"], LN_EPS)
    return x.reshape(B, t2, HIDDEN)


# ----------------------------------------------------------------------------
class HubertEncoderWrapper:
    """Wrapper for AV-HuBERT encoder (Pallas/JAX port)."""

    def __init__(self, w2v_params):
        self.w2v_params = w2v_params
        self._extract = jax.jit(extract_features)

    def __call__(self, source, padding_mask=None):
        features = self._extract(self.w2v_params, source, padding_mask)
        return {"encoder_out": features[0], "padding_mask": padding_mask}


# ----------------------------------------------------------------------------
if __name__ == "__main__":
    key = jax.random.PRNGKey(0)
    k_param, k_src = jax.random.split(key)

    B, T_RAW = 2, 95  # conv1 (k=10,s=5) -> 18 frames; conv2 (k=4,s=2) -> 8 frames
    source = jax.random.normal(k_src, (B, T_RAW), jnp.float32)

    params = init_params(k_param)
    model = HubertEncoderWrapper(params)

    out = model(source, padding_mask=None)
    enc = jax.block_until_ready(out["encoder_out"])
    assert enc.shape == (B, 8, HIDDEN), enc.shape
    assert out["padding_mask"] is None

    # Tolerance-asserted pure-JAX reference (approx reciprocal in-kernel softmax
    # and bf16 accumulation-order differences are the only deviations).
    ref = jax.block_until_ready(ref_extract_features(params, source))
    max_diff = float(jnp.max(jnp.abs(enc - ref)))
    assert max_diff < 5e-2, f"kernel vs reference mismatch: max|diff|={max_diff}"

    print("KERNEL_OK")
</pallas_src>

<mosaic_0001>
module attributes {stable_mosaic.version = 11 : i64} {
  func.func @_encoder_kernel(%arg0: i32, %arg1: memref<1x10x10xf32, #tpu.memory_space<vmem>>, %arg2: memref<10x32xbf16, #tpu.memory_space<vmem>>, %arg3: memref<1x32xf32, #tpu.memory_space<vmem>>, %arg4: memref<128x32xbf16, #tpu.memory_space<vmem>>, %arg5: memref<1x32xf32, #tpu.memory_space<vmem>>, %arg6: memref<1x32xf32, #tpu.memory_space<vmem>>, %arg7: memref<1x32xf32, #tpu.memory_space<vmem>>, %arg8: memref<32x32xbf16, #tpu.memory_space<vmem>>, %arg9: memref<1x32xf32, #tpu.memory_space<vmem>>, %arg10: memref<32x96xbf16, #tpu.memory_space<vmem>>, %arg11: memref<1x96xf32, #tpu.memory_space<vmem>>, %arg12: memref<32x32xbf16, #tpu.memory_space<vmem>>, %arg13: memref<1x32xf32, #tpu.memory_space<vmem>>, %arg14: memref<1x32xf32, #tpu.memory_space<vmem>>, %arg15: memref<1x32xf32, #tpu.memory_space<vmem>>, %arg16: memref<32x64xbf16, #tpu.memory_space<vmem>>, %arg17: memref<1x64xf32, #tpu.memory_space<vmem>>, %arg18: memref<64x32xbf16, #tpu.memory_space<vmem>>, %arg19: memref<1x32xf32, #tpu.memory_space<vmem>>, %arg20: memref<1x32xf32, #tpu.memory_space<vmem>>, %arg21: memref<1x32xf32, #tpu.memory_space<vmem>>, %arg22: memref<32x96xbf16, #tpu.memory_space<vmem>>, %arg23: memref<1x96xf32, #tpu.memory_space<vmem>>, %arg24: memref<32x32xbf16, #tpu.memory_space<vmem>>, %arg25: memref<1x32xf32, #tpu.memory_space<vmem>>, %arg26: memref<1x32xf32, #tpu.memory_space<vmem>>, %arg27: memref<1x32xf32, #tpu.memory_space<vmem>>, %arg28: memref<32x64xbf16, #tpu.memory_space<vmem>>, %arg29: memref<1x64xf32, #tpu.memory_space<vmem>>, %arg30: memref<64x32xbf16, #tpu.memory_space<vmem>>, %arg31: memref<1x32xf32, #tpu.memory_space<vmem>>, %arg32: memref<1x32xf32, #tpu.memory_space<vmem>>, %arg33: memref<1x32xf32, #tpu.memory_space<vmem>>, %arg34: memref<1x8x32xf32, #tpu.memory_space<vmem>>) attributes {dimension_semantics = [#tpu.dimension_semantics<parallel>], iteration_bounds = array<i64: 2>, scalar_prefetch = 0 : i64, scratch_operands = 0 : i64, tpu.core_type = #tpu.core_type<tc>, window_params = [{transform_indices = @transform_0, window_bounds = array<i64: 1, 10, 10>}, {pipeline_mode = #tpu.pipeline_mode<synchronous>, transform_indices = @transform_1, window_bounds = array<i64: 10, 32>}, {pipeline_mode = #tpu.pipeline_mode<synchronous>, transform_indices = @transform_2, window_bounds = array<i64: 1, 32>}, {pipeline_mode = #tpu.pipeline_mode<synchronous>, transform_indices = @transform_3, window_bounds = array<i64: 128, 32>}, {pipeline_mode = #tpu.pipeline_mode<synchronous>, transform_indices = @transform_4, window_bounds = array<i64: 1, 32>}, {pipeline_mode = #tpu.pipeline_mode<synchronous>, transform_indices = @transform_5, window_bounds = array<i64: 1, 32>}, {pipeline_mode = #tpu.pipeline_mode<synchronous>, transform_indices = @transform_6, window_bounds = array<i64: 1, 32>}, {pipeline_mode = #tpu.pipeline_mode<synchronous>, transform_indices = @transform_7, window_bounds = array<i64: 32, 32>}, {pipeline_mode = #tpu.pipeline_mode<synchronous>, transform_indices = @transform_8, window_bounds = array<i64: 1, 32>}, {pipeline_mode = #tpu.pipeline_mode<synchronous>, transform_indices = @transform_9, window_bounds = array<i64: 32, 96>}, {pipeline_mode = #tpu.pipeline_mode<synchronous>, transform_indices = @transform_10, window_bounds = array<i64: 1, 96>}, {pipeline_mode = #tpu.pipeline_mode<synchronous>, transform_indices = @transform_11, window_bounds = array<i64: 32, 32>}, {pipeline_mode = #tpu.pipeline_mode<synchronous>, transform_indices = @transform_12, window_bounds = array<i64: 1, 32>}, {pipeline_mode = #tpu.pipeline_mode<synchronous>, transform_indices = @transform_13, window_bounds = array<i64: 1, 32>}, {pipeline_mode = #tpu.pipeline_mode<synchronous>, transform_indices = @transform_14, window_bounds = array<i64: 1, 32>}, {pipeline_mode = #tpu.pipeline_mode<synchronous>, transform_indices = @transform_15, window_bounds = array<i64: 32, 64>}, {pipeline_mode = #tpu.pipeline_mode<synchronous>, transform_indices = @transform_16, window_bounds = array<i64: 1, 64>}, {pipeline_mode = #tpu.pipeline_mode<synchronous>, transform_indices = @transform_17, window_bounds = array<i64: 64, 32>}, {pipeline_mode = #tpu.pipeline_mode<synchronous>, transform_indices = @transform_18, window_bounds = array<i64: 1, 32>}, {pipeline_mode = #tpu.pipeline_mode<synchronous>, transform_indices = @transform_19, window_bounds = array<i64: 1, 32>}, {pipeline_mode = #tpu.pipeline_mode<synchronous>, transform_indices = @transform_20, window_bounds = array<i64: 1, 32>}, {pipeline_mode = #tpu.pipeline_mode<synchronous>, transform_indices = @transform_21, window_bounds = array<i64: 32, 96>}, {pipeline_mode = #tpu.pipeline_mode<synchronous>, transform_indices = @transform_22, window_bounds = array<i64: 1, 96>}, {pipeline_mode = #tpu.pipeline_mode<synchronous>, transform_indices = @transform_23, window_bounds = array<i64: 32, 32>}, {pipeline_mode = #tpu.pipeline_mode<synchronous>, transform_indices = @transform_24, window_bounds = array<i64: 1, 32>}, {pipeline_mode = #tpu.pipeline_mode<synchronous>, transform_indices = @transform_25, window_bounds = array<i64: 1, 32>}, {pipeline_mode = #tpu.pipeline_mode<synchronous>, transform_indices = @transform_26, window_bounds = array<i64: 1, 32>}, {pipeline_mode = #tpu.pipeline_mode<synchronous>, transform_indices = @transform_27, window_bounds = array<i64: 32, 64>}, {pipeline_mode = #tpu.pipeline_mode<synchronous>, transform_indices = @transform_28, window_bounds = array<i64: 1, 64>}, {pipeline_mode = #tpu.pipeline_mode<synchronous>, transform_indices = @transform_29, window_bounds = array<i64: 64, 32>}, {pipeline_mode = #tpu.pipeline_mode<synchronous>, transform_indices = @transform_30, window_bounds = array<i64: 1, 32>}, {pipeline_mode = #tpu.pipeline_mode<synchronous>, transform_indices = @transform_31, window_bounds = array<i64: 1, 32>}, {pipeline_mode = #tpu.pipeline_mode<synchronous>, transform_indices = @transform_32, window_bounds = array<i64: 1, 32>}, {transform_indices = @transform_33, window_bounds = array<i64: 1, 8, 32>}]} {
    %c0 = arith.constant 0 : index
    %c0_0 = arith.constant 0 : index
    %c0_1 = arith.constant 0 : index
    %0 = vector.load %arg1[%c0, %c0_0, %c0_1] : memref<1x10x10xf32, #tpu.memory_space<vmem>>, vector<1x10x10xf32>
    %1 = vector.shape_cast %0 : vector<1x10x10xf32> to vector<10x10xf32>
    %c0_2 = arith.constant 0 : index
    %c0_3 = arith.constant 0 : index
    %2 = vector.load %arg3[%c0_2, %c0_3] : memref<1x32xf32, #tpu.memory_space<vmem>>, vector<1x32xf32>
    %3 = vector.extract_strided_slice %1 {offsets = [0, 0], sizes = [9, 10], strides = [1, 1]} : vector<10x10xf32> to vector<9x10xf32>
    %4 = vector.extract_strided_slice %1 {offsets = [0, 5], sizes = [9, 5], strides = [1, 1]} : vector<10x10xf32> to vector<9x5xf32>
    %5 = vector.extract_strided_slice %1 {offsets = [1, 0], sizes = [9, 5], strides = [1, 1]} : vector<10x10xf32> to vector<9x5xf32>
    %6 = tpu.concatenate %4, %5 in 1 : vector<9x5xf32>, vector<9x5xf32> -> vector<9x10xf32>
    %7 = arith.truncf %3 : vector<9x10xf32> to vector<9x10xbf16>
    %c0_4 = arith.constant 0 : index
    %c0_5 = arith.constant 0 : index
    %8 = vector.load %arg2[%c0_4, %c0_5] : memref<10x32xbf16, #tpu.memory_space<vmem>>, vector<10x32xbf16>
    %cst = arith.constant dense<0.000000e+00> : vector<9x32xf32>
    %9 = tpu.matmul %7, %8, %cst {dimension_numbers = #tpu.dot_dimension_numbers<[1], [0], [0], [1], [0, 0, 1, 1], [], []>} : vector<9x10xbf16>, vector<10x32xbf16>, vector<9x32xf32> -> vector<9x32xf32>
    %10 = vector.broadcast %2 : vector<1x32xf32> to vector<9x32xf32>
    %11 = arith.addf %9, %10 : vector<9x32xf32>
    %cst_6 = arith.constant 5.000000e-01 : f32
    %12 = vector.broadcast %cst_6 : f32 to vector<9x32xf32>
    %13 = arith.mulf %12, %11 : vector<9x32xf32>
    %cst_7 = arith.constant 4.471500e-02 : f32
    %14 = vector.broadcast %cst_7 : f32 to vector<9x32xf32>
    %15 = arith.mulf %14, %11 : vector<9x32xf32>
    %16 = arith.mulf %15, %11 : vector<9x32xf32>
    %17 = arith.mulf %16, %11 : vector<9x32xf32>
    %18 = arith.addf %11, %17 : vector<9x32xf32>
    %cst_8 = arith.constant 0.797884583 : f32
    %19 = vector.broadcast %cst_8 : f32 to vector<9x32xf32>
    %20 = arith.mulf %19, %18 : vector<9x32xf32>
    %21 = math.tanh %20 : vector<9x32xf32>
    %cst_9 = arith.constant 1.000000e+00 : f32
    %22 = vector.broadcast %cst_9 : f32 to vector<9x32xf32>
    %23 = arith.addf %22, %21 : vector<9x32xf32>
    %24 = arith.mulf %13, %23 : vector<9x32xf32>
    %25 = arith.truncf %6 : vector<9x10xf32> to vector<9x10xbf16>
    %c0_10 = arith.constant 0 : index
    %c0_11 = arith.constant 0 : index
    %26 = vector.load %arg2[%c0_10, %c0_11] : memref<10x32xbf16, #tpu.memory_space<vmem>>, vector<10x32xbf16>
    %cst_12 = arith.constant dense<0.000000e+00> : vector<9x32xf32>
    %27 = tpu.matmul %25, %26, %cst_12 {dimension_numbers = #tpu.dot_dimension_numbers<[1], [0], [0], [1], [0, 0, 1, 1], [], []>} : vector<9x10xbf16>, vector<10x32xbf16>, vector<9x32xf32> -> vector<9x32xf32>
    %28 = vector.broadcast %2 : vector<1x32xf32> to vector<9x32xf32>
    %29 = arith.addf %27, %28 : vector<9x32xf32>
    %cst_13 = arith.constant 5.000000e-01 : f32
    %30 = vector.broadcast %cst_13 : f32 to vector<9x32xf32>
    %31 = arith.mulf %30, %29 : vector<9x32xf32>
    %cst_14 = arith.constant 4.471500e-02 : f32
    %32 = vector.broadcast %cst_14 : f32 to vector<9x32xf32>
    %33 = arith.mulf %32, %29 : vector<9x32xf32>
    %34 = arith.mulf %33, %29 : vector<9x32xf32>
    %35 = arith.mulf %34, %29 : vector<9x32xf32>
    %36 = arith.addf %29, %35 : vector<9x32xf32>
    %cst_15 = arith.constant 0.797884583 : f32
    %37 = vector.broadcast %cst_15 : f32 to vector<9x32xf32>
    %38 = arith.mulf %37, %36 : vector<9x32xf32>
    %39 = math.tanh %38 : vector<9x32xf32>
    %cst_16 = arith.constant 1.000000e+00 : f32
    %40 = vector.broadcast %cst_16 : f32 to vector<9x32xf32>
    %41 = arith.addf %40, %39 : vector<9x32xf32>
    %42 = arith.mulf %31, %41 : vector<9x32xf32>
    %43 = tpu.concatenate %24, %42 in 1 : vector<9x32xf32>, vector<9x32xf32> -> vector<9x64xf32>
    %44 = vector.extract_strided_slice %43 {offsets = [0, 0], sizes = [8, 32], strides = [1, 1]} : vector<9x64xf32> to vector<8x32xf32>
    %45 = vector.extract_strided_slice %43 {offsets = [0, 32], sizes = [8, 32], strides = [1, 1]} : vector<9x64xf32> to vector<8x32xf32>
    %46 = vector.extract_strided_slice %43 {offsets = [1, 0], sizes = [8, 32], strides = [1, 1]} : vector<9x64xf32> to vector<8x32xf32>
    %47 = vector.extract_strided_slice %43 {offsets = [1, 32], sizes = [8, 32], strides = [1, 1]} : vector<9x64xf32> to vector<8x32xf32>
    %48 = tpu.concatenate %44, %45, %46, %47 in 1 : vector<8x32xf32>, vector<8x32xf32>, vector<8x32xf32>, vector<8x32xf32> -> vector<8x128xf32>
    %49 = arith.truncf %48 : vector<8x128xf32> to vector<8x128xbf16>
    %c0_17 = arith.constant 0 : index
    %c0_18 = arith.constant 0 : index
    %50 = vector.load %arg4[%c0_17, %c0_18] : memref<128x32xbf16, #tpu.memory_space<vmem>>, vector<128x32xbf16>
    %cst_19 = arith.constant dense<0.000000e+00> : vector<8x32xf32>
    %51 = tpu.matmul %49, %50, %cst_19 {dimension_numbers = #tpu.dot_dimension_numbers<[1], [0], [0], [1], [0, 0, 1, 1], [], []>} : vector<8x128xbf16>, vector<128x32xbf16>, vector<8x32xf32> -> vector<8x32xf32>
    %c0_20 = arith.constant 0 : index
    %c0_21 = arith.constant 0 : index
    %52 = vector.load %arg5[%c0_20, %c0_21] : memref<1x32xf32, #tpu.memory_space<vmem>>, vector<1x32xf32>
    %53 = vector.broadcast %52 : vector<1x32xf32> to vector<8x32xf32>
    %54 = arith.addf %51, %53 : vector<8x32xf32>
    %cst_22 = arith.constant 5.000000e-01 : f32
    %55 = vector.broadcast %cst_22 : f32 to vector<8x32xf32>
    %56 = arith.mulf %55, %54 : vector<8x32xf32>
    %cst_23 = arith.constant 4.471500e-02 : f32
    %57 = vector.broadcast %cst_23 : f32 to vector<8x32xf32>
    %58 = arith.mulf %57, %54 : vector<8x32xf32>
    %59 = arith.mulf %58, %54 : vector<8x32xf32>
    %60 = arith.mulf %59, %54 : vector<8x32xf32>
    %61 = arith.addf %54, %60 : vector<8x32xf32>
    %cst_24 = arith.constant 0.797884583 : f32
    %62 = vector.broadcast %cst_24 : f32 to vector<8x32xf32>
    %63 = arith.mulf %62, %61 : vector<8x32xf32>
    %64 = math.tanh %63 : vector<8x32xf32>
    %cst_25 = arith.constant 1.000000e+00 : f32
    %65 = vector.broadcast %cst_25 : f32 to vector<8x32xf32>
    %66 = arith.addf %65, %64 : vector<8x32xf32>
    %67 = arith.mulf %56, %66 : vector<8x32xf32>
    %c0_26 = arith.constant 0 : index
    %c0_27 = arith.constant 0 : index
    %68 = vector.load %arg6[%c0_26, %c0_27] : memref<1x32xf32, #tpu.memory_space<vmem>>, vector<1x32xf32>
    %c0_28 = arith.constant 0 : index
    %c0_29 = arith.constant 0 : index
    %69 = vector.load %arg7[%c0_28, %c0_29] : memref<1x32xf32, #tpu.memory_space<vmem>>, vector<1x32xf32>
    %cst_30 = arith.constant dense<0.000000e+00> : vector<8xf32>
    %70 = vector.multi_reduction <add>, %67, %cst_30 [1] : vector<8x32xf32> to vector<8xf32>
    %71 = vector.shape_cast %70 : vector<8xf32> to vector<8x1xf32>
    %cst_31 = arith.constant 3.200000e+01 : f32
    %72 = vector.broadcast %cst_31 : f32 to vector<8x1xf32>
    %73 = arith.divf %71, %72 : vector<8x1xf32>
    %74 = vector.broadcast %73 : vector<8x1xf32> to vector<8x32xf32>
    %75 = arith.subf %67, %74 : vector<8x32xf32>
    %76 = arith.mulf %75, %75 : vector<8x32xf32>
    %cst_32 = arith.constant dense<0.000000e+00> : vector<8xf32>
    %77 = vector.multi_reduction <add>, %76, %cst_32 [1] : vector<8x32xf32> to vector<8xf32>
    %78 = vector.shape_cast %77 : vector<8xf32> to vector<8x1xf32>
    %cst_33 = arith.constant 3.200000e+01 : f32
    %79 = vector.broadcast %cst_33 : f32 to vector<8x1xf32>
    %80 = arith.divf %78, %79 : vector<8x1xf32>
    %81 = vector.broadcast %73 : vector<8x1xf32> to vector<8x32xf32>
    %82 = arith.subf %67, %81 : vector<8x32xf32>
    %cst_34 = arith.constant 9.99999974E-6 : f32
    %83 = vector.broadcast %cst_34 : f32 to vector<8x1xf32>
    %84 = arith.addf %80, %83 : vector<8x1xf32>
    %85 = math.rsqrt %84 : vector<8x1xf32>
    %86 = vector.broadcast %85 : vector<8x1xf32> to vector<8x32xf32>
    %87 = arith.mulf %82, %86 : vector<8x32xf32>
    %88 = vector.broadcast %68 : vector<1x32xf32> to vector<8x32xf32>
    %89 = arith.mulf %87, %88 : vector<8x32xf32>
    %90 = vector.broadcast %69 : vector<1x32xf32> to vector<8x32xf32>
    %91 = arith.addf %89, %90 : vector<8x32xf32>
    %92 = arith.truncf %91 : vector<8x32xf32> to vector<8x32xbf16>
    %c0_35 = arith.constant 0 : index
    %c0_36 = arith.constant 0 : index
    %93 = vector.load %arg8[%c0_35, %c0_36] : memref<32x32xbf16, #tpu.memory_space<vmem>>, vector<32x32xbf16>
    %cst_37 = arith.constant dense<0.000000e+00> : vector<8x32xf32>
    %94 = tpu.matmul %92, %93, %cst_37 {dimension_numbers = #tpu.dot_dimension_numbers<[1], [0], [0], [1], [0, 0, 1, 1], [], []>} : vector<8x32xbf16>, vector<32x32xbf16>, vector<8x32xf32> -> vector<8x32xf32>
    %c0_38 = arith.constant 0 : index
    %c0_39 = arith.constant 0 : index
    %95 = vector.load %arg9[%c0_38, %c0_39] : memref<1x32xf32, #tpu.memory_space<vmem>>, vector<1x32xf32>
    %96 = vector.broadcast %95 : vector<1x32xf32> to vector<8x32xf32>
    %97 = arith.addf %94, %96 : vector<8x32xf32>
    %98 = arith.truncf %97 : vector<8x32xf32> to vector<8x32xbf16>
    %c0_40 = arith.constant 0 : index
    %c0_41 = arith.constant 0 : index
    %99 = vector.load %arg10[%c0_40, %c0_41] : memref<32x96xbf16, #tpu.memory_space<vmem>>, vector<32x96xbf16>
    %cst_42 = arith.constant dense<0.000000e+00> : vector<8x96xf32>
    %100 = tpu.matmul %98, %99, %cst_42 {dimension_numbers = #tpu.dot_dimension_numbers<[1], [0], [0], [1], [0, 0, 1, 1], [], []>} : vector<8x32xbf16>, vector<32x96xbf16>, vector<8x96xf32> -> vector<8x96xf32>
    %c0_43 = arith.constant 0 : index
    %c0_44 = arith.constant 0 : index
    %101 = vector.load %arg11[%c0_43, %c0_44] : memref<1x96xf32, #tpu.memory_space<vmem>>, vector<1x96xf32>
    %102 = vector.broadcast %101 : vector<1x96xf32> to vector<8x96xf32>
    %103 = arith.addf %100, %102 : vector<8x96xf32>
    %104 = vector.extract_strided_slice %103 {offsets = [0, 0], sizes = [8, 8], strides = [1, 1]} : vector<8x96xf32> to vector<8x8xf32>
    %105 = vector.extract_strided_slice %103 {offsets = [0, 32], sizes = [8, 8], strides = [1, 1]} : vector<8x96xf32> to vector<8x8xf32>
    %106 = vector.extract_strided_slice %103 {offsets = [0, 64], sizes = [8, 8], strides = [1, 1]} : vector<8x96xf32> to vector<8x8xf32>
    %107 = arith.truncf %104 : vector<8x8xf32> to vector<8x8xbf16>
    %108 = arith.truncf %105 : vector<8x8xf32> to vector<8x8xbf16>
    %cst_45 = arith.constant dense<0.000000e+00> : vector<8x8xf32>
    %109 = tpu.matmul %107, %108, %cst_45 {dimension_numbers = #tpu.dot_dimension_numbers<[1], [1], [0], [0], [0, 0, 1, 0], [], []>} : vector<8x8xbf16>, vector<8x8xbf16>, vector<8x8xf32> -> vector<8x8xf32>
    %cst_46 = arith.constant 0.353553385 : f32
    %110 = vector.broadcast %cst_46 : f32 to vector<8x8xf32>
    %111 = arith.mulf %109, %110 : vector<8x8xf32>
    %cst_47 = arith.constant dense<0xFF800000> : vector<8xf32>
    %112 = vector.multi_reduction <maximumf>, %111, %cst_47 [1] : vector<8x8xf32> to vector<8xf32>
    %113 = vector.shape_cast %112 : vector<8xf32> to vector<8x1xf32>
    %114 = vector.broadcast %113 : vector<8x1xf32> to vector<8x8xf32>
    %115 = arith.subf %111, %114 : vector<8x8xf32>
    %116 = math.exp %115 : vector<8x8xf32>
    %cst_48 = arith.constant dense<0.000000e+00> : vector<8xf32>
    %117 = vector.multi_reduction <add>, %116, %cst_48 [1] : vector<8x8xf32> to vector<8xf32>
    %118 = vector.shape_cast %117 : vector<8xf32> to vector<8x1xf32>
    %119 = tpu.reciprocal %118 {approx = true} : vector<8x1xf32> -> vector<8x1xf32>
    %120 = vector.broadcast %119 : vector<8x1xf32> to vector<8x8xf32>
    %121 = arith.mulf %116, %120 : vector<8x8xf32>
    %122 = arith.truncf %121 : vector<8x8xf32> to vector<8x8xbf16>
    %123 = arith.truncf %106 : vector<8x8xf32> to vector<8x8xbf16>
    %cst_49 = arith.constant dense<0.000000e+00> : vector<8x8xf32>
    %124 = tpu.matmul %122, %123, %cst_49 {dimension_numbers = #tpu.dot_dimension_numbers<[1], [0], [0], [1], [0, 0, 1, 1], [], []>} : vector<8x8xbf16>, vector<8x8xbf16>, vector<8x8xf32> -> vector<8x8xf32>
    %125 = vector.extract_strided_slice %103 {offsets = [0, 8], sizes = [8, 8], strides = [1, 1]} : vector<8x96xf32> to vector<8x8xf32>
    %126 = vector.extract_strided_slice %103 {offsets = [0, 40], sizes = [8, 8], strides = [1, 1]} : vector<8x96xf32> to vector<8x8xf32>
    %127 = vector.extract_strided_slice %103 {offsets = [0, 72], sizes = [8, 8], strides = [1, 1]} : vector<8x96xf32> to vector<8x8xf32>
    %128 = arith.truncf %125 : vector<8x8xf32> to vector<8x8xbf16>
    %129 = arith.truncf %126 : vector<8x8xf32> to vector<8x8xbf16>
    %cst_50 = arith.constant dense<0.000000e+00> : vector<8x8xf32>
    %130 = tpu.matmul %128, %129, %cst_50 {dimension_numbers = #tpu.dot_dimension_numbers<[1], [1], [0], [0], [0, 0, 1, 0], [], []>} : vector<8x8xbf16>, vector<8x8xbf16>, vector<8x8xf32> -> vector<8x8xf32>
    %cst_51 = arith.constant 0.353553385 : f32
    %131 = vector.broadcast %cst_51 : f32 to vector<8x8xf32>
    %132 = arith.mulf %130, %131 : vector<8x8xf32>
    %cst_52 = arith.constant dense<0xFF800000> : vector<8xf32>
    %133 = vector.multi_reduction <maximumf>, %132, %cst_52 [1] : vector<8x8xf32> to vector<8xf32>
    %134 = vector.shape_cast %133 : vector<8xf32> to vector<8x1xf32>
    %135 = vector.broadcast %134 : vector<8x1xf32> to vector<8x8xf32>
    %136 = arith.subf %132, %135 : vector<8x8xf32>
    %137 = math.exp %136 : vector<8x8xf32>
    %cst_53 = arith.constant dense<0.000000e+00> : vector<8xf32>
    %138 = vector.multi_reduction <add>, %137, %cst_53 [1] : vector<8x8xf32> to vector<8xf32>
    %139 = vector.shape_cast %138 : vector<8xf32> to vector<8x1xf32>
    %140 = tpu.reciprocal %139 {approx = true} : vector<8x1xf32> -> vector<8x1xf32>
    %141 = vector.broadcast %140 : vector<8x1xf32> to vector<8x8xf32>
    %142 = arith.mulf %137, %141 : vector<8x8xf32>
    %143 = arith.truncf %142 : vector<8x8xf32> to vector<8x8xbf16>
    %144 = arith.truncf %127 : vector<8x8xf32> to vector<8x8xbf16>
    %cst_54 = arith.constant dense<0.000000e+00> : vector<8x8xf32>
    %145 = tpu.matmul %143, %144, %cst_54 {dimension_numbers = #tpu.dot_dimension_numbers<[1], [0], [0], [1], [0, 0, 1, 1], [], []>} : vector<8x8xbf16>, vector<8x8xbf16>, vector<8x8xf32> -> vector<8x8xf32>
    %146 = vector.extract_strided_slice %103 {offsets = [0, 16], sizes = [8, 8], strides = [1, 1]} : vector<8x96xf32> to vector<8x8xf32>
    %147 = vector.extract_strided_slice %103 {offsets = [0, 48], sizes = [8, 8], strides = [1, 1]} : vector<8x96xf32> to vector<8x8xf32>
    %148 = vector.extract_strided_slice %103 {offsets = [0, 80], sizes = [8, 8], strides = [1, 1]} : vector<8x96xf32> to vector<8x8xf32>
    %149 = arith.truncf %146 : vector<8x8xf32> to vector<8x8xbf16>
    %150 = arith.truncf %147 : vector<8x8xf32> to vector<8x8xbf16>
    %cst_55 = arith.constant dense<0.000000e+00> : vector<8x8xf32>
    %151 = tpu.matmul %149, %150, %cst_55 {dimension_numbers = #tpu.dot_dimension_numbers<[1], [1], [0], [0], [0, 0, 1, 0], [], []>} : vector<8x8xbf16>, vector<8x8xbf16>, vector<8x8xf32> -> vector<8x8xf32>
    %cst_56 = arith.constant 0.353553385 : f32
    %152 = vector.broadcast %cst_56 : f32 to vector<8x8xf32>
    %153 = arith.mulf %151, %152 : vector<8x8xf32>
    %cst_57 = arith.constant dense<0xFF800000> : vector<8xf32>
    %154 = vector.multi_reduction <maximumf>, %153, %cst_57 [1] : vector<8x8xf32> to vector<8xf32>
    %155 = vector.shape_cast %154 : vector<8xf32> to vector<8x1xf32>
    %156 = vector.broadcast %155 : vector<8x1xf32> to vector<8x8xf32>
    %157 = arith.subf %153, %156 : vector<8x8xf32>
    %158 = math.exp %157 : vector<8x8xf32>
    %cst_58 = arith.constant dense<0.000000e+00> : vector<8xf32>
    %159 = vector.multi_reduction <add>, %158, %cst_58 [1] : vector<8x8xf32> to vector<8xf32>
    %160 = vector.shape_cast %159 : vector<8xf32> to vector<8x1xf32>
    %161 = tpu.reciprocal %160 {approx = true} : vector<8x1xf32> -> vector<8x1xf32>
    %162 = vector.broadcast %161 : vector<8x1xf32> to vector<8x8xf32>
    %163 = arith.mulf %158, %162 : vector<8x8xf32>
    %164 = arith.truncf %163 : vector<8x8xf32> to vector<8x8xbf16>
    %165 = arith.truncf %148 : vector<8x8xf32> to vector<8x8xbf16>
    %cst_59 = arith.constant dense<0.000000e+00> : vector<8x8xf32>
    %166 = tpu.matmul %164, %165, %cst_59 {dimension_numbers = #tpu.dot_dimension_numbers<[1], [0], [0], [1], [0, 0, 1, 1], [], []>} : vector<8x8xbf16>, vector<8x8xbf16>, vector<8x8xf32> -> vector<8x8xf32>
    %167 = vector.extract_strided_slice %103 {offsets = [0, 24], sizes = [8, 8], strides = [1, 1]} : vector<8x96xf32> to vector<8x8xf32>
    %168 = vector.extract_strided_slice %103 {offsets = [0, 56], sizes = [8, 8], strides = [1, 1]} : vector<8x96xf32> to vector<8x8xf32>
    %169 = vector.extract_strided_slice %103 {offsets = [0, 88], sizes = [8, 8], strides = [1, 1]} : vector<8x96xf32> to vector<8x8xf32>
    %170 = arith.truncf %167 : vector<8x8xf32> to vector<8x8xbf16>
    %171 = arith.truncf %168 : vector<8x8xf32> to vector<8x8xbf16>
    %cst_60 = arith.constant dense<0.000000e+00> : vector<8x8xf32>
    %172 = tpu.matmul %170, %171, %cst_60 {dimension_numbers = #tpu.dot_dimension_numbers<[1], [1], [0], [0], [0, 0, 1, 0], [], []>} : vector<8x8xbf16>, vector<8x8xbf16>, vector<8x8xf32> -> vector<8x8xf32>
    %cst_61 = arith.constant 0.353553385 : f32
    %173 = vector.broadcast %cst_61 : f32 to vector<8x8xf32>
    %174 = arith.mulf %172, %173 : vector<8x8xf32>
    %cst_62 = arith.constant dense<0xFF800000> : vector<8xf32>
    %175 = vector.multi_reduction <maximumf>, %174, %cst_62 [1] : vector<8x8xf32> to vector<8xf32>
    %176 = vector.shape_cast %175 : vector<8xf32> to vector<8x1xf32>
    %177 = vector.broadcast %176 : vector<8x1xf32> to vector<8x8xf32>
    %178 = arith.subf %174, %177 : vector<8x8xf32>
    %179 = math.exp %178 : vector<8x8xf32>
    %cst_63 = arith.constant dense<0.000000e+00> : vector<8xf32>
    %180 = vector.multi_reduction <add>, %179, %cst_63 [1] : vector<8x8xf32> to vector<8xf32>
    %181 = vector.shape_cast %180 : vector<8xf32> to vector<8x1xf32>
    %182 = tpu.reciprocal %181 {approx = true} : vector<8x1xf32> -> vector<8x1xf32>
    %183 = vector.broadcast %182 : vector<8x1xf32> to vector<8x8xf32>
    %184 = arith.mulf %179, %183 : vector<8x8xf32>
    %185 = arith.truncf %184 : vector<8x8xf32> to vector<8x8xbf16>
    %186 = arith.truncf %169 : vector<8x8xf32> to vector<8x8xbf16>
    %cst_64 = arith.constant dense<0.000000e+00> : vector<8x8xf32>
    %187 = tpu.matmul %185, %186, %cst_64 {dimension_numbers = #tpu.dot_dimension_numbers<[1], [0], [0], [1], [0, 0, 1, 1], [], []>} : vector<8x8xbf16>, vector<8x8xbf16>, vector<8x8xf32> -> vector<8x8xf32>
    %188 = tpu.concatenate %124, %145, %166, %187 in 1 : vector<8x8xf32>, vector<8x8xf32>, vector<8x8xf32>, vector<8x8xf32> -> vector<8x32xf32>
    %189 = arith.truncf %188 : vector<8x32xf32> to vector<8x32xbf16>
    %c0_65 = arith.constant 0 : index
    %c0_66 = arith.constant 0 : index
    %190 = vector.load %arg12[%c0_65, %c0_66] : memref<32x32xbf16, #tpu.memory_space<vmem>>, vector<32x32xbf16>
    %cst_67 = arith.constant dense<0.000000e+00> : vector<8x32xf32>
    %191 = tpu.matmul %189, %190, %cst_67 {dimension_numbers = #tpu.dot_dimension_numbers<[1], [0], [0], [1], [0, 0, 1, 1], [], []>} : vector<8x32xbf16>, vector<32x32xbf16>, vector<8x32xf32> -> vector<8x32xf32>
    %c0_68 = arith.constant 0 : index
    %c0_69 = arith.constant 0 : index
    %192 = vector.load %arg13[%c0_68, %c0_69] : memref<1x32xf32, #tpu.memory_space<vmem>>, vector<1x32xf32>
    %193 = vector.broadcast %192 : vector<1x32xf32> to vector<8x32xf32>
    %194 = arith.addf %191, %193 : vector<8x32xf32>
    %195 = arith.addf %194, %97 : vector<8x32xf32>
    %c0_70 = arith.constant 0 : index
    %c0_71 = arith.constant 0 : index
    %196 = vector.load %arg14[%c0_70, %c0_71] : memref<1x32xf32, #tpu.memory_space<vmem>>, vector<1x32xf32>
    %c0_72 = arith.constant 0 : index
    %c0_73 = arith.constant 0 : index
    %197 = vector.load %arg15[%c0_72, %c0_73] : memref<1x32xf32, #tpu.memory_space<vmem>>, vector<1x32xf32>
    %cst_74 = arith.constant dense<0.000000e+00> : vector<8xf32>
    %198 = vector.multi_reduction <add>, %195, %cst_74 [1] : vector<8x32xf32> to vector<8xf32>
    %199 = vector.shape_cast %198 : vector<8xf32> to vector<8x1xf32>
    %cst_75 = arith.constant 3.200000e+01 : f32
    %200 = vector.broadcast %cst_75 : f32 to vector<8x1xf32>
    %201 = arith.divf %199, %200 : vector<8x1xf32>
    %202 = vector.broadcast %201 : vector<8x1xf32> to vector<8x32xf32>
    %203 = arith.subf %195, %202 : vector<8x32xf32>
    %204 = arith.mulf %203, %203 : vector<8x32xf32>
    %cst_76 = arith.constant dense<0.000000e+00> : vector<8xf32>
    %205 = vector.multi_reduction <add>, %204, %cst_76 [1] : vector<8x32xf32> to vector<8xf32>
    %206 = vector.shape_cast %205 : vector<8xf32> to vector<8x1xf32>
    %cst_77 = arith.constant 3.200000e+01 : f32
    %207 = vector.broadcast %cst_77 : f32 to vector<8x1xf32>
    %208 = arith.divf %206, %207 : vector<8x1xf32>
    %209 = vector.broadcast %201 : vector<8x1xf32> to vector<8x32xf32>
    %210 = arith.subf %195, %209 : vector<8x32xf32>
    %cst_78 = arith.constant 9.99999974E-6 : f32
    %211 = vector.broadcast %cst_78 : f32 to vector<8x1xf32>
    %212 = arith.addf %208, %211 : vector<8x1xf32>
    %213 = math.rsqrt %212 : vector<8x1xf32>
    %214 = vector.broadcast %213 : vector<8x1xf32> to vector<8x32xf32>
    %215 = arith.mulf %210, %214 : vector<8x32xf32>
    %216 = vector.broadcast %196 : vector<1x32xf32> to vector<8x32xf32>
    %217 = arith.mulf %215, %216 : vector<8x32xf32>
    %218 = vector.broadcast %197 : vector<1x32xf32> to vector<8x32xf32>
    %219 = arith.addf %217, %218 : vector<8x32xf32>
    %220 = arith.truncf %219 : vector<8x32xf32> to vector<8x32xbf16>
    %c0_79 = arith.constant 0 : index
    %c0_80 = arith.constant 0 : index
    %221 = vector.load %arg16[%c0_79, %c0_80] : memref<32x64xbf16, #tpu.memory_space<vmem>>, vector<32x64xbf16>
    %cst_81 = arith.constant dense<0.000000e+00> : vector<8x64xf32>
    %222 = tpu.matmul %220, %221, %cst_81 {dimension_numbers = #tpu.dot_dimension_numbers<[1], [0], [0], [1], [0, 0, 1, 1], [], []>} : vector<8x32xbf16>, vector<32x64xbf16>, vector<8x64xf32> -> vector<8x64xf32>
    %c0_82 = arith.constant 0 : index
    %c0_83 = arith.constant 0 : index
    %223 = vector.load %arg17[%c0_82, %c0_83] : memref<1x64xf32, #tpu.memory_space<vmem>>, vector<1x64xf32>
    %224 = vector.broadcast %223 : vector<1x64xf32> to vector<8x64xf32>
    %225 = arith.addf %222, %224 : vector<8x64xf32>
    %cst_84 = arith.constant 5.000000e-01 : f32
    %226 = vector.broadcast %cst_84 : f32 to vector<8x64xf32>
    %227 = arith.mulf %226, %225 : vector<8x64xf32>
    %cst_85 = arith.constant 4.471500e-02 : f32
    %228 = vector.broadcast %cst_85 : f32 to vector<8x64xf32>
    %229 = arith.mulf %228, %225 : vector<8x64xf32>
    %230 = arith.mulf %229, %225 : vector<8x64xf32>
    %231 = arith.mulf %230, %225 : vector<8x64xf32>
    %232 = arith.addf %225, %231 : vector<8x64xf32>
    %cst_86 = arith.constant 0.797884583 : f32
    %233 = vector.broadcast %cst_86 : f32 to vector<8x64xf32>
    %234 = arith.mulf %233, %232 : vector<8x64xf32>
    %235 = math.tanh %234 : vector<8x64xf32>
    %cst_87 = arith.constant 1.000000e+00 : f32
    %236 = vector.broadcast %cst_87 : f32 to vector<8x64xf32>
    %237 = arith.addf %236, %235 : vector<8x64xf32>
    %238 = arith.mulf %227, %237 : vector<8x64xf32>
    %239 = arith.truncf %238 : vector<8x64xf32> to vector<8x64xbf16>
    %c0_88 = arith.constant 0 : index
    %c0_89 = arith.constant 0 : index
    %240 = vector.load %arg18[%c0_88, %c0_89] : memref<64x32xbf16, #tpu.memory_space<vmem>>, vector<64x32xbf16>
    %cst_90 = arith.constant dense<0.000000e+00> : vector<8x32xf32>
    %241 = tpu.matmul %239, %240, %cst_90 {dimension_numbers = #tpu.dot_dimension_numbers<[1], [0], [0], [1], [0, 0, 1, 1], [], []>} : vector<8x64xbf16>, vector<64x32xbf16>, vector<8x32xf32> -> vector<8x32xf32>
    %c0_91 = arith.constant 0 : index
    %c0_92 = arith.constant 0 : index
    %242 = vector.load %arg19[%c0_91, %c0_92] : memref<1x32xf32, #tpu.memory_space<vmem>>, vector<1x32xf32>
    %243 = vector.broadcast %242 : vector<1x32xf32> to vector<8x32xf32>
    %244 = arith.addf %241, %243 : vector<8x32xf32>
    %245 = arith.addf %244, %219 : vector<8x32xf32>
    %c0_93 = arith.constant 0 : index
    %c0_94 = arith.constant 0 : index
    %246 = vector.load %arg20[%c0_93, %c0_94] : memref<1x32xf32, #tpu.memory_space<vmem>>, vector<1x32xf32>
    %c0_95 = arith.constant 0 : index
    %c0_96 = arith.constant 0 : index
    %247 = vector.load %arg21[%c0_95, %c0_96] : memref<1x32xf32, #tpu.memory_space<vmem>>, vector<1x32xf32>
    %cst_97 = arith.constant dense<0.000000e+00> : vector<8xf32>
    %248 = vector.multi_reduction <add>, %245, %cst_97 [1] : vector<8x32xf32> to vector<8xf32>
    %249 = vector.shape_cast %248 : vector<8xf32> to vector<8x1xf32>
    %cst_98 = arith.constant 3.200000e+01 : f32
    %250 = vector.broadcast %cst_98 : f32 to vector<8x1xf32>
    %251 = arith.divf %249, %250 : vector<8x1xf32>
    %252 = vector.broadcast %251 : vector<8x1xf32> to vector<8x32xf32>
    %253 = arith.subf %245, %252 : vector<8x32xf32>
    %254 = arith.mulf %253, %253 : vector<8x32xf32>
    %cst_99 = arith.constant dense<0.000000e+00> : vector<8xf32>
    %255 = vector.multi_reduction <add>, %254, %cst_99 [1] : vector<8x32xf32> to vector<8xf32>
    %256 = vector.shape_cast %255 : vector<8xf32> to vector<8x1xf32>
    %cst_100 = arith.constant 3.200000e+01 : f32
    %257 = vector.broadcast %cst_100 : f32 to vector<8x1xf32>
    %258 = arith.divf %256, %257 : vector<8x1xf32>
    %259 = vector.broadcast %251 : vector<8x1xf32> to vector<8x32xf32>
    %260 = arith.subf %245, %259 : vector<8x32xf32>
    %cst_101 = arith.constant 9.99999974E-6 : f32
    %261 = vector.broadcast %cst_101 : f32 to vector<8x1xf32>
    %262 = arith.addf %258, %261 : vector<8x1xf32>
    %263 = math.rsqrt %262 : vector<8x1xf32>
    %264 = vector.broadcast %263 : vector<8x1xf32> to vector<8x32xf32>
    %265 = arith.mulf %260, %264 : vector<8x32xf32>
    %266 = vector.broadcast %246 : vector<1x32xf32> to vector<8x32xf32>
    %267 = arith.mulf %265, %266 : vector<8x32xf32>
    %268 = vector.broadcast %247 : vector<1x32xf32> to vector<8x32xf32>
    %269 = arith.addf %267, %268 : vector<8x32xf32>
    %270 = arith.truncf %269 : vector<8x32xf32> to vector<8x32xbf16>
    %c0_102 = arith.constant 0 : index
    %c0_103 = arith.constant 0 : index
    %271 = vector.load %arg22[%c0_102, %c0_103] : memref<32x96xbf16, #tpu.memory_space<vmem>>, vector<32x96xbf16>
    %cst_104 = arith.constant dense<0.000000e+00> : vector<8x96xf32>
    %272 = tpu.matmul %270, %271, %cst_104 {dimension_numbers = #tpu.dot_dimension_numbers<[1], [0], [0], [1], [0, 0, 1, 1], [], []>} : vector<8x32xbf16>, vector<32x96xbf16>, vector<8x96xf32> -> vector<8x96xf32>
    %c0_105 = arith.constant 0 : index
    %c0_106 = arith.constant 0 : index
    %273 = vector.load %arg23[%c0_105, %c0_106] : memref<1x96xf32, #tpu.memory_space<vmem>>, vector<1x96xf32>
    %274 = vector.broadcast %273 : vector<1x96xf32> to vector<8x96xf32>
    %275 = arith.addf %272, %274 : vector<8x96xf32>
    %276 = vector.extract_strided_slice %275 {offsets = [0, 0], sizes = [8, 8], strides = [1, 1]} : vector<8x96xf32> to vector<8x8xf32>
    %277 = vector.extract_strided_slice %275 {offsets = [0, 32], sizes = [8, 8], strides = [1, 1]} : vector<8x96xf32> to vector<8x8xf32>
    %278 = vector.extract_strided_slice %275 {offsets = [0, 64], sizes = [8, 8], strides = [1, 1]} : vector<8x96xf32> to vector<8x8xf32>
    %279 = arith.truncf %276 : vector<8x8xf32> to vector<8x8xbf16>
    %280 = arith.truncf %277 : vector<8x8xf32> to vector<8x8xbf16>
    %cst_107 = arith.constant dense<0.000000e+00> : vector<8x8xf32>
    %281 = tpu.matmul %279, %280, %cst_107 {dimension_numbers = #tpu.dot_dimension_numbers<[1], [1], [0], [0], [0, 0, 1, 0], [], []>} : vector<8x8xbf16>, vector<8x8xbf16>, vector<8x8xf32> -> vector<8x8xf32>
    %cst_108 = arith.constant 0.353553385 : f32
    %282 = vector.broadcast %cst_108 : f32 to vector<8x8xf32>
    %283 = arith.mulf %281, %282 : vector<8x8xf32>
    %cst_109 = arith.constant dense<0xFF800000> : vector<8xf32>
    %284 = vector.multi_reduction <maximumf>, %283, %cst_109 [1] : vector<8x8xf32> to vector<8xf32>
    %285 = vector.shape_cast %284 : vector<8xf32> to vector<8x1xf32>
    %286 = vector.broadcast %285 : vector<8x1xf32> to vector<8x8xf32>
    %287 = arith.subf %283, %286 : vector<8x8xf32>
    %288 = math.exp %287 : vector<8x8xf32>
    %cst_110 = arith.constant dense<0.000000e+00> : vector<8xf32>
    %289 = vector.multi_reduction <add>, %288, %cst_110 [1] : vector<8x8xf32> to vector<8xf32>
    %290 = vector.shape_cast %289 : vector<8xf32> to vector<8x1xf32>
    %291 = tpu.reciprocal %290 {approx = true} : vector<8x1xf32> -> vector<8x1xf32>
    %292 = vector.broadcast %291 : vector<8x1xf32> to vector<8x8xf32>
    %293 = arith.mulf %288, %292 : vector<8x8xf32>
    %294 = arith.truncf %293 : vector<8x8xf32> to vector<8x8xbf16>
    %295 = arith.truncf %278 : vector<8x8xf32> to vector<8x8xbf16>
    %cst_111 = arith.constant dense<0.000000e+00> : vector<8x8xf32>
    %296 = tpu.matmul %294, %295, %cst_111 {dimension_numbers = #tpu.dot_dimension_numbers<[1], [0], [0], [1], [0, 0, 1, 1], [], []>} : vector<8x8xbf16>, vector<8x8xbf16>, vector<8x8xf32> -> vector<8x8xf32>
    %297 = vector.extract_strided_slice %275 {offsets = [0, 8], sizes = [8, 8], strides = [1, 1]} : vector<8x96xf32> to vector<8x8xf32>
    %298 = vector.extract_strided_slice %275 {offsets = [0, 40], sizes = [8, 8], strides = [1, 1]} : vector<8x96xf32> to vector<8x8xf32>
    %299 = vector.extract_strided_slice %275 {offsets = [0, 72], sizes = [8, 8], strides = [1, 1]} : vector<8x96xf32> to vector<8x8xf32>
    %300 = arith.truncf %297 : vector<8x8xf32> to vector<8x8xbf16>
    %301 = arith.truncf %298 : vector<8x8xf32> to vector<8x8xbf16>
    %cst_112 = arith.constant dense<0.000000e+00> : vector<8x8xf32>
    %302 = tpu.matmul %300, %301, %cst_112 {dimension_numbers = #tpu.dot_dimension_numbers<[1], [1], [0], [0], [0, 0, 1, 0], [], []>} : vector<8x8xbf16>, vector<8x8xbf16>, vector<8x8xf32> -> vector<8x8xf32>
    %cst_113 = arith.constant 0.353553385 : f32
    %303 = vector.broadcast %cst_113 : f32 to vector<8x8xf32>
    %304 = arith.mulf %302, %303 : vector<8x8xf32>
    %cst_114 = arith.constant dense<0xFF800000> : vector<8xf32>
    %305 = vector.multi_reduction <maximumf>, %304, %cst_114 [1] : vector<8x8xf32> to vector<8xf32>
    %306 = vector.shape_cast %305 : vector<8xf32> to vector<8x1xf32>
    %307 = vector.broadcast %306 : vector<8x1xf32> to vector<8x8xf32>
    %308 = arith.subf %304, %307 : vector<8x8xf32>
    %309 = math.exp %308 : vector<8x8xf32>
    %cst_115 = arith.constant dense<0.000000e+00> : vector<8xf32>
    %310 = vector.multi_reduction <add>, %309, %cst_115 [1] : vector<8x8xf32> to vector<8xf32>
    %311 = vector.shape_cast %310 : vector<8xf32> to vector<8x1xf32>
    %312 = tpu.reciprocal %311 {approx = true} : vector<8x1xf32> -> vector<8x1xf32>
    %313 = vector.broadcast %312 : vector<8x1xf32> to vector<8x8xf32>
    %314 = arith.mulf %309, %313 : vector<8x8xf32>
    %315 = arith.truncf %314 : vector<8x8xf32> to vector<8x8xbf16>
    %316 = arith.truncf %299 : vector<8x8xf32> to vector<8x8xbf16>
    %cst_116 = arith.constant dense<0.000000e+00> : vector<8x8xf32>
    %317 = tpu.matmul %315, %316, %cst_116 {dimension_numbers = #tpu.dot_dimension_numbers<[1], [0], [0], [1], [0, 0, 1, 1], [], []>} : vector<8x8xbf16>, vector<8x8xbf16>, vector<8x8xf32> -> vector<8x8xf32>
    %318 = vector.extract_strided_slice %275 {offsets = [0, 16], sizes = [8, 8], strides = [1, 1]} : vector<8x96xf32> to vector<8x8xf32>
    %319 = vector.extract_strided_slice %275 {offsets = [0, 48], sizes = [8, 8], strides = [1, 1]} : vector<8x96xf32> to vector<8x8xf32>
    %320 = vector.extract_strided_slice %275 {offsets = [0, 80], sizes = [8, 8], strides = [1, 1]} : vector<8x96xf32> to vector<8x8xf32>
    %321 = arith.truncf %318 : vector<8x8xf32> to vector<8x8xbf16>
    %322 = arith.truncf %319 : vector<8x8xf32> to vector<8x8xbf16>
    %cst_117 = arith.constant dense<0.000000e+00> : vector<8x8xf32>
    %323 = tpu.matmul %321, %322, %cst_117 {dimension_numbers = #tpu.dot_dimension_numbers<[1], [1], [0], [0], [0, 0, 1, 0], [], []>} : vector<8x8xbf16>, vector<8x8xbf16>, vector<8x8xf32> -> vector<8x8xf32>
    %cst_118 = arith.constant 0.353553385 : f32
    %324 = vector.broadcast %cst_118 : f32 to vector<8x8xf32>
    %325 = arith.mulf %323, %324 : vector<8x8xf32>
    %cst_119 = arith.constant dense<0xFF800000> : vector<8xf32>
    %326 = vector.multi_reduction <maximumf>, %325, %cst_119 [1] : vector<8x8xf32> to vector<8xf32>
    %327 = vector.shape_cast %326 : vector<8xf32> to vector<8x1xf32>
    %328 = vector.broadcast %327 : vector<8x1xf32> to vector<8x8xf32>
    %329 = arith.subf %325, %328 : vector<8x8xf32>
    %330 = math.exp %329 : vector<8x8xf32>
    %cst_120 = arith.constant dense<0.000000e+00> : vector<8xf32>
    %331 = vector.multi_reduction <add>, %330, %cst_120 [1] : vector<8x8xf32> to vector<8xf32>
    %332 = vector.shape_cast %331 : vector<8xf32> to vector<8x1xf32>
    %333 = tpu.reciprocal %332 {approx = true} : vector<8x1xf32> -> vector<8x1xf32>
    %334 = vector.broadcast %333 : vector<8x1xf32> to vector<8x8xf32>
    %335 = arith.mulf %330, %334 : vector<8x8xf32>
    %336 = arith.truncf %335 : vector<8x8xf32> to vector<8x8xbf16>
    %337 = arith.truncf %320 : vector<8x8xf32> to vector<8x8xbf16>
    %cst_121 = arith.constant dense<0.000000e+00> : vector<8x8xf32>
    %338 = tpu.matmul %336, %337, %cst_121 {dimension_numbers = #tpu.dot_dimension_numbers<[1], [0], [0], [1], [0, 0, 1, 1], [], []>} : vector<8x8xbf16>, vector<8x8xbf16>, vector<8x8xf32> -> vector<8x8xf32>
    %339 = vector.extract_strided_slice %275 {offsets = [0, 24], sizes = [8, 8], strides = [1, 1]} : vector<8x96xf32> to vector<8x8xf32>
    %340 = vector.extract_strided_slice %275 {offsets = [0, 56], sizes = [8, 8], strides = [1, 1]} : vector<8x96xf32> to vector<8x8xf32>
    %341 = vector.extract_strided_slice %275 {offsets = [0, 88], sizes = [8, 8], strides = [1, 1]} : vector<8x96xf32> to vector<8x8xf32>
    %342 = arith.truncf %339 : vector<8x8xf32> to vector<8x8xbf16>
    %343 = arith.truncf %340 : vector<8x8xf32> to vector<8x8xbf16>
    %cst_122 = arith.constant dense<0.000000e+00> : vector<8x8xf32>
    %344 = tpu.matmul %342, %343, %cst_122 {dimension_numbers = #tpu.dot_dimension_numbers<[1], [1], [0], [0], [0, 0, 1, 0], [], []>} : vector<8x8xbf16>, vector<8x8xbf16>, vector<8x8xf32> -> vector<8x8xf32>
    %cst_123 = arith.constant 0.353553385 : f32
    %345 = vector.broadcast %cst_123 : f32 to vector<8x8xf32>
    %346 = arith.mulf %344, %345 : vector<8x8xf32>
    %cst_124 = arith.constant dense<0xFF800000> : vector<8xf32>
    %347 = vector.multi_reduction <maximumf>, %346, %cst_124 [1] : vector<8x8xf32> to vector<8xf32>
    %348 = vector.shape_cast %347 : vector<8xf32> to vector<8x1xf32>
    %349 = vector.broadcast %348 : vector<8x1xf32> to vector<8x8xf32>
    %350 = arith.subf %346, %349 : vector<8x8xf32>
    %351 = math.exp %350 : vector<8x8xf32>
    %cst_125 = arith.constant dense<0.000000e+00> : vector<8xf32>
    %352 = vector.multi_reduction <add>, %351, %cst_125 [1] : vector<8x8xf32> to vector<8xf32>
    %353 = vector.shape_cast %352 : vector<8xf32> to vector<8x1xf32>
    %354 = tpu.reciprocal %353 {approx = true} : vector<8x1xf32> -> vector<8x1xf32>
    %355 = vector.broadcast %354 : vector<8x1xf32> to vector<8x8xf32>
    %356 = arith.mulf %351, %355 : vector<8x8xf32>
    %357 = arith.truncf %356 : vector<8x8xf32> to vector<8x8xbf16>
    %358 = arith.truncf %341 : vector<8x8xf32> to vector<8x8xbf16>
    %cst_126 = arith.constant dense<0.000000e+00> : vector<8x8xf32>
    %359 = tpu.matmul %357, %358, %cst_126 {dimension_numbers = #tpu.dot_dimension_numbers<[1], [0], [0], [1], [0, 0, 1, 1], [], []>} : vector<8x8xbf16>, vector<8x8xbf16>, vector<8x8xf32> -> vector<8x8xf32>
    %360 = tpu.concatenate %296, %317, %338, %359 in 1 : vector<8x8xf32>, vector<8x8xf32>, vector<8x8xf32>, vector<8x8xf32> -> vector<8x32xf32>
    %361 = arith.truncf %360 : vector<8x32xf32> to vector<8x32xbf16>
    %c0_127 = arith.constant 0 : index
    %c0_128 = arith.constant 0 : index
    %362 = vector.load %arg24[%c0_127, %c0_128] : memref<32x32xbf16, #tpu.memory_space<vmem>>, vector<32x32xbf16>
    %cst_129 = arith.constant dense<0.000000e+00> : vector<8x32xf32>
    %363 = tpu.matmul %361, %362, %cst_129 {dimension_numbers = #tpu.dot_dimension_numbers<[1], [0], [0], [1], [0, 0, 1, 1], [], []>} : vector<8x32xbf16>, vector<32x32xbf16>, vector<8x32xf32> -> vector<8x32xf32>
    %c0_130 = arith.constant 0 : index
    %c0_131 = arith.constant 0 : index
    %364 = vector.load %arg25[%c0_130, %c0_131] : memref<1x32xf32, #tpu.memory_space<vmem>>, vector<1x32xf32>
    %365 = vector.broadcast %364 : vector<1x32xf32> to vector<8x32xf32>
    %366 = arith.addf %363, %365 : vector<8x32xf32>
    %367 = arith.addf %366, %269 : vector<8x32xf32>
    %c0_132 = arith.constant 0 : index
    %c0_133 = arith.constant 0 : index
    %368 = vector.load %arg26[%c0_132, %c0_133] : memref<1x32xf32, #tpu.memory_space<vmem>>, vector<1x32xf32>
    %c0_134 = arith.constant 0 : index
    %c0_135 = arith.constant 0 : index
    %369 = vector.load %arg27[%c0_134, %c0_135] : memref<1x32xf32, #tpu.memory_space<vmem>>, vector<1x32xf32>
    %cst_136 = arith.constant dense<0.000000e+00> : vector<8xf32>
    %370 = vector.multi_reduction <add>, %367, %cst_136 [1] : vector<8x32xf32> to vector<8xf32>
    %371 = vector.shape_cast %370 : vector<8xf32> to vector<8x1xf32>
    %cst_137 = arith.constant 3.200000e+01 : f32
    %372 = vector.broadcast %cst_137 : f32 to vector<8x1xf32>
    %373 = arith.divf %371, %372 : vector<8x1xf32>
    %374 = vector.broadcast %373 : vector<8x1xf32> to vector<8x32xf32>
    %375 = arith.subf %367, %374 : vector<8x32xf32>
    %376 = arith.mulf %375, %375 : vector<8x32xf32>
    %cst_138 = arith.constant dense<0.000000e+00> : vector<8xf32>
    %377 = vector.multi_reduction <add>, %376, %cst_138 [1] : vector<8x32xf32> to vector<8xf32>
    %378 = vector.shape_cast %377 : vector<8xf32> to vector<8x1xf32>
    %cst_139 = arith.constant 3.200000e+01 : f32
    %379 = vector.broadcast %cst_139 : f32 to vector<8x1xf32>
    %380 = arith.divf %378, %379 : vector<8x1xf32>
    %381 = vector.broadcast %373 : vector<8x1xf32> to vector<8x32xf32>
    %382 = arith.subf %367, %381 : vector<8x32xf32>
    %cst_140 = arith.constant 9.99999974E-6 : f32
    %383 = vector.broadcast %cst_140 : f32 to vector<8x1xf32>
    %384 = arith.addf %380, %383 : vector<8x1xf32>
    %385 = math.rsqrt %384 : vector<8x1xf32>
    %386 = vector.broadcast %385 : vector<8x1xf32> to vector<8x32xf32>
    %387 = arith.mulf %382, %386 : vector<8x32xf32>
    %388 = vector.broadcast %368 : vector<1x32xf32> to vector<8x32xf32>
    %389 = arith.mulf %387, %388 : vector<8x32xf32>
    %390 = vector.broadcast %369 : vector<1x32xf32> to vector<8x32xf32>
    %391 = arith.addf %389, %390 : vector<8x32xf32>
    %392 = arith.truncf %391 : vector<8x32xf32> to vector<8x32xbf16>
    %c0_141 = arith.constant 0 : index
    %c0_142 = arith.constant 0 : index
    %393 = vector.load %arg28[%c0_141, %c0_142] : memref<32x64xbf16, #tpu.memory_space<vmem>>, vector<32x64xbf16>
    %cst_143 = arith.constant dense<0.000000e+00> : vector<8x64xf32>
    %394 = tpu.matmul %392, %393, %cst_143 {dimension_numbers = #tpu.dot_dimension_numbers<[1], [0], [0], [1], [0, 0, 1, 1], [], []>} : vector<8x32xbf16>, vector<32x64xbf16>, vector<8x64xf32> -> vector<8x64xf32>
    %c0_144 = arith.constant 0 : index
    %c0_145 = arith.constant 0 : index
    %395 = vector.load %arg29[%c0_144, %c0_145] : memref<1x64xf32, #tpu.memory_space<vmem>>, vector<1x64xf32>
    %396 = vector.broadcast %395 : vector<1x64xf32> to vector<8x64xf32>
    %397 = arith.addf %394, %396 : vector<8x64xf32>
    %cst_146 = arith.constant 5.000000e-01 : f32
    %398 = vector.broadcast %cst_146 : f32 to vector<8x64xf32>
    %399 = arith.mulf %398, %397 : vector<8x64xf32>
    %cst_147 = arith.constant 4.471500e-02 : f32
    %400 = vector.broadcast %cst_147 : f32 to vector<8x64xf32>
    %401 = arith.mulf %400, %397 : vector<8x64xf32>
    %402 = arith.mulf %401, %397 : vector<8x64xf32>
    %403 = arith.mulf %402, %397 : vector<8x64xf32>
    %404 = arith.addf %397, %403 : vector<8x64xf32>
    %cst_148 = arith.constant 0.797884583 : f32
    %405 = vector.broadcast %cst_148 : f32 to vector<8x64xf32>
    %406 = arith.mulf %405, %404 : vector<8x64xf32>
    %407 = math.tanh %406 : vector<8x64xf32>
    %cst_149 = arith.constant 1.000000e+00 : f32
    %408 = vector.broadcast %cst_149 : f32 to vector<8x64xf32>
    %409 = arith.addf %408, %407 : vector<8x64xf32>
    %410 = arith.mulf %399, %409 : vector<8x64xf32>
    %411 = arith.truncf %410 : vector<8x64xf32> to vector<8x64xbf16>
    %c0_150 = arith.constant 0 : index
    %c0_151 = arith.constant 0 : index
    %412 = vector.load %arg30[%c0_150, %c0_151] : memref<64x32xbf16, #tpu.memory_space<vmem>>, vector<64x32xbf16>
    %cst_152 = arith.constant dense<0.000000e+00> : vector<8x32xf32>
    %413 = tpu.matmul %411, %412, %cst_152 {dimension_numbers = #tpu.dot_dimension_numbers<[1], [0], [0], [1], [0, 0, 1, 1], [], []>} : vector<8x64xbf16>, vector<64x32xbf16>, vector<8x32xf32> -> vector<8x32xf32>
    %c0_153 = arith.constant 0 : index
    %c0_154 = arith.constant 0 : index
    %414 = vector.load %arg31[%c0_153, %c0_154] : memref<1x32xf32, #tpu.memory_space<vmem>>, vector<1x32xf32>
    %415 = vector.broadcast %414 : vector<1x32xf32> to vector<8x32xf32>
    %416 = arith.addf %413, %415 : vector<8x32xf32>
    %417 = arith.addf %416, %391 : vector<8x32xf32>
    %c0_155 = arith.constant 0 : index
    %c0_156 = arith.constant 0 : index
    %418 = vector.load %arg32[%c0_155, %c0_156] : memref<1x32xf32, #tpu.memory_space<vmem>>, vector<1x32xf32>
    %c0_157 = arith.constant 0 : index
    %c0_158 = arith.constant 0 : index
    %419 = vector.load %arg33[%c0_157, %c0_158] : memref<1x32xf32, #tpu.memory_space<vmem>>, vector<1x32xf32>
    %cst_159 = arith.constant dense<0.000000e+00> : vector<8xf32>
    %420 = vector.multi_reduction <add>, %417, %cst_159 [1] : vector<8x32xf32> to vector<8xf32>
    %421 = vector.shape_cast %420 : vector<8xf32> to vector<8x1xf32>
    %cst_160 = arith.constant 3.200000e+01 : f32
    %422 = vector.broadcast %cst_160 : f32 to vector<8x1xf32>
    %423 = arith.divf %421, %422 : vector<8x1xf32>
    %424 = vector.broadcast %423 : vector<8x1xf32> to vector<8x32xf32>
    %425 = arith.subf %417, %424 : vector<8x32xf32>
    %426 = arith.mulf %425, %425 : vector<8x32xf32>
    %cst_161 = arith.constant dense<0.000000e+00> : vector<8xf32>
    %427 = vector.multi_reduction <add>, %426, %cst_161 [1] : vector<8x32xf32> to vector<8xf32>
    %428 = vector.shape_cast %427 : vector<8xf32> to vector<8x1xf32>
    %cst_162 = arith.constant 3.200000e+01 : f32
    %429 = vector.broadcast %cst_162 : f32 to vector<8x1xf32>
    %430 = arith.divf %428, %429 : vector<8x1xf32>
    %431 = vector.broadcast %423 : vector<8x1xf32> to vector<8x32xf32>
    %432 = arith.subf %417, %431 : vector<8x32xf32>
    %cst_163 = arith.constant 9.99999974E-6 : f32
    %433 = vector.broadcast %cst_163 : f32 to vector<8x1xf32>
    %434 = arith.addf %430, %433 : vector<8x1xf32>
    %435 = math.rsqrt %434 : vector<8x1xf32>
    %436 = vector.broadcast %435 : vector<8x1xf32> to vector<8x32xf32>
    %437 = arith.mulf %432, %436 : vector<8x32xf32>
    %438 = vector.broadcast %418 : vector<1x32xf32> to vector<8x32xf32>
    %439 = arith.mulf %437, %438 : vector<8x32xf32>
    %440 = vector.broadcast %419 : vector<1x32xf32> to vector<8x32xf32>
    %441 = arith.addf %439, %440 : vector<8x32xf32>
    %c0_164 = arith.constant 0 : index
    %c0_165 = arith.constant 0 : index
    %c0_166 = arith.constant 0 : index
    %442 = vector.load %arg34[%c0_164, %c0_165, %c0_166] : memref<1x8x32xf32, #tpu.memory_space<vmem>>, vector<1x8x32xf32>
    %443 = vector.shape_cast %442 : vector<1x8x32xf32> to vector<8x32xf32>
    %444 = vector.shape_cast %441 : vector<8x32xf32> to vector<1x8x32xf32>
    tpu.vector_store %arg34[%c0_164, %c0_165, %c0_166], %444 {strides = array<i32>} : memref<1x8x32xf32, #tpu.memory_space<vmem>>, vector<1x8x32xf32>,
    return
  }
  func.func @transform_0(%arg0: i32) -> (i32, i32, i32) {
    %c0_i32 = arith.constant 0 : i32
    %c0_i32_0 = arith.constant 0 : i32
    %c0_i32_1 = arith.constant 0 : i32
    return %arg0, %c0_i32, %c0_i32_0 : i32, i32, i32
  }
  func.func @transform_1(%arg0: i32) -> (i32, i32) {
    %c0_i32 = arith.constant 0 : i32
    %c0_i32_0 = arith.constant 0 : i32
    %c0_i32_1 = arith.constant 0 : i32
    return %c0_i32, %c0_i32_0 : i32, i32
  }
  func.func @transform_2(%arg0: i32) -> (i32, i32) {
    %c0_i32 = arith.constant 0 : i32
    %c0_i32_0 = arith.constant 0 : i32
    %c0_i32_1 = arith.constant 0 : i32
    return %c0_i32, %c0_i32_0 : i32, i32
  }
  func.func @transform_3(%arg0: i32) -> (i32, i32) {
    %c0_i32 = arith.constant 0 : i32
    %c0_i32_0 = arith.constant 0 : i32
    %c0_i32_1 = arith.constant 0 : i32
    return %c0_i32, %c0_i32_0 : i32, i32
  }
  func.func @transform_4(%arg0: i32) -> (i32, i32) {
    %c0_i32 = arith.constant 0 : i32
    %c0_i32_0 = arith.constant 0 : i32
    %c0_i32_1 = arith.constant 0 : i32
    return %c0_i32, %c0_i32_0 : i32, i32
  }
  func.func @transform_5(%arg0: i32) -> (i32, i32) {
    %c0_i32 = arith.constant 0 : i32
    %c0_i32_0 = arith.constant 0 : i32
    %c0_i32_1 = arith.constant 0 : i32
    return %c0_i32, %c0_i32_0 : i32, i32
  }
  func.func @transform_6(%arg0: i32) -> (i32, i32) {
    %c0_i32 = arith.constant 0 : i32
    %c0_i32_0 = arith.constant 0 : i32
    %c0_i32_1 = arith.constant 0 : i32
    return %c0_i32, %c0_i32_0 : i32, i32
  }
  func.func @transform_7(%arg0: i32) -> (i32, i32) {
    %c0_i32 = arith.constant 0 : i32
    %c0_i32_0 = arith.constant 0 : i32
    %c0_i32_1 = arith.constant 0 : i32
    return %c0_i32, %c0_i32_0 : i32, i32
  }
  func.func @transform_8(%arg0: i32) -> (i32, i32) {
    %c0_i32 = arith.constant 0 : i32
    %c0_i32_0 = arith.constant 0 : i32
    %c0_i32_1 = arith.constant 0 : i32
    return %c0_i32, %c0_i32_0 : i32, i32
  }
  func.func @transform_9(%arg0: i32) -> (i32, i32) {
    %c0_i32 = arith.constant 0 : i32
    %c0_i32_0 = arith.constant 0 : i32
    %c0_i32_1 = arith.constant 0 : i32
    return %c0_i32, %c0_i32_0 : i32, i32
  }
  func.func @transform_10(%arg0: i32) -> (i32, i32) {
    %c0_i32 = arith.constant 0 : i32
    %c0_i32_0 = arith.constant 0 : i32
    %c0_i32_1 = arith.constant 0 : i32
    return %c0_i32, %c0_i32_0 : i32, i32
  }
  func.func @transform_11(%arg0: i32) -> (i32, i32) {
    %c0_i32 = arith.constant 0 : i32
    %c0_i32_0 = arith.constant 0 : i32
    %c0_i32_1 = arith.constant 0 : i32
    return %c0_i32, %c0_i32_0 : i32, i32
  }
  func.func @transform_12(%arg0: i32) -> (i32, i32) {
    %c0_i32 = arith.constant 0 : i32
    %c0_i32_0 = arith.constant 0 : i32
    %c0_i32_1 = arith.constant 0 : i32
    return %c0_i32, %c0_i32_0 : i32, i32
  }
  func.func @transform_13(%arg0: i32) -> (i32, i32) {
    %c0_i32 = arith.constant 0 : i32
    %c0_i32_0 = arith.constant 0 : i32
    %c0_i32_1 = arith.constant 0 : i32
    return %c0_i32, %c0_i32_0 : i32, i32
  }
  func.func @transform_14(%arg0: i32) -> (i32, i32) {
    %c0_i32 = arith.constant 0 : i32
    %c0_i32_0 = arith.constant 0 : i32
    %c0_i32_1 = arith.constant 0 : i32
    return %c0_i32, %c0_i32_0 : i32, i32
  }
  func.func @transform_15(%arg0: i32) -> (i32, i32) {
    %c0_i32 = arith.constant 0 : i32
    %c0_i32_0 = arith.constant 0 : i32
    %c0_i32_1 = arith.constant 0 : i32
    return %c0_i32, %c0_i32_0 : i32, i32
  }
  func.func @transform_16(%arg0: i32) -> (i32, i32) {
    %c0_i32 = arith.constant 0 : i32
    %c0_i32_0 = arith.constant 0 : i32
    %c0_i32_1 = arith.constant 0 : i32
    return %c0_i32, %c0_i32_0 : i32, i32
  }
  func.func @transform_17(%arg0: i32) -> (i32, i32) {
    %c0_i32 = arith.constant 0 : i32
    %c0_i32_0 = arith.constant 0 : i32
    %c0_i32_1 = arith.constant 0 : i32
    return %c0_i32, %c0_i32_0 : i32, i32
  }
  func.func @transform_18(%arg0: i32) -> (i32, i32) {
    %c0_i32 = arith.constant 0 : i32
    %c0_i32_0 = arith.constant 0 : i32
    %c0_i32_1 = arith.constant 0 : i32
    return %c0_i32, %c0_i32_0 : i32, i32
  }
  func.func @transform_19(%arg0: i32) -> (i32, i32) {
    %c0_i32 = arith.constant 0 : i32
    %c0_i32_0 = arith.constant 0 : i32
    %c0_i32_1 = arith.constant 0 : i32
    return %c0_i32, %c0_i32_0 : i32, i32
  }
  func.func @transform_20(%arg0: i32) -> (i32, i32) {
    %c0_i32 = arith.constant 0 : i32
    %c0_i32_0 = arith.constant 0 : i32
    %c0_i32_1 = arith.constant 0 : i32
    return %c0_i32, %c0_i32_0 : i32, i32
  }
  func.func @transform_21(%arg0: i32) -> (i32, i32) {
    %c0_i32 = arith.constant 0 : i32
    %c0_i32_0 = arith.constant 0 : i32
    %c0_i32_1 = arith.constant 0 : i32
    return %c0_i32, %c0_i32_0 : i32, i32
  }
  func.func @transform_22(%arg0: i32) -> (i32, i32) {
    %c0_i32 = arith.constant 0 : i32
    %c0_i32_0 = arith.constant 0 : i32
    %c0_i32_1 = arith.constant 0 : i32
    return %c0_i32, %c0_i32_0 : i32, i32
  }
  func.func @transform_23(%arg0: i32) -> (i32, i32) {
    %c0_i32 = arith.constant 0 : i32
    %c0_i32_0 = arith.constant 0 : i32
    %c0_i32_1 = arith.constant 0 : i32
    return %c0_i32, %c0_i32_0 : i32, i32
  }
  func.func @transform_24(%arg0: i32) -> (i32, i32) {
    %c0_i32 = arith.constant 0 : i32
    %c0_i32_0 = arith.constant 0 : i32
    %c0_i32_1 = arith.constant 0 : i32
    return %c0_i32, %c0_i32_0 : i32, i32
  }
  func.func @transform_25(%arg0: i32) -> (i32, i32) {
    %c0_i32 = arith.constant 0 : i32
    %c0_i32_0 = arith.constant 0 : i32
    %c0_i32_1 = arith.constant 0 : i32
    return %c0_i32, %c0_i32_0 : i32, i32
  }
  func.func @transform_26(%arg0: i32) -> (i32, i32) {
    %c0_i32 = arith.constant 0 : i32
    %c0_i32_0 = arith.constant 0 : i32
    %c0_i32_1 = arith.constant 0 : i32
    return %c0_i32, %c0_i32_0 : i32, i32
  }
  func.func @transform_27(%arg0: i32) -> (i32, i32) {
    %c0_i32 = arith.constant 0 : i32
    %c0_i32_0 = arith.constant 0 : i32
    %c0_i32_1 = arith.constant 0 : i32
    return %c0_i32, %c0_i32_0 : i32, i32
  }
  func.func @transform_28(%arg0: i32) -> (i32, i32) {
    %c0_i32 = arith.constant 0 : i32
    %c0_i32_0 = arith.constant 0 : i32
    %c0_i32_1 = arith.constant 0 : i32
    return %c0_i32, %c0_i32_0 : i32, i32
  }
  func.func @transform_29(%arg0: i32) -> (i32, i32) {
    %c0_i32 = arith.constant 0 : i32
    %c0_i32_0 = arith.constant 0 : i32
    %c0_i32_1 = arith.constant 0 : i32
    return %c0_i32, %c0_i32_0 : i32, i32
  }
  func.func @transform_30(%arg0: i32) -> (i32, i32) {
    %c0_i32 = arith.constant 0 : i32
    %c0_i32_0 = arith.constant 0 : i32
    %c0_i32_1 = arith.constant 0 : i32
    return %c0_i32, %c0_i32_0 : i32, i32
  }
  func.func @transform_31(%arg0: i32) -> (i32, i32) {
    %c0_i32 = arith.constant 0 : i32
    %c0_i32_0 = arith.constant 0 : i32
    %c0_i32_1 = arith.constant 0 : i32
    return %c0_i32, %c0_i32_0 : i32, i32
  }
  func.func @transform_32(%arg0: i32) -> (i32, i32) {
    %c0_i32 = arith.constant 0 : i32
    %c0_i32_0 = arith.constant 0 : i32
    %c0_i32_1 = arith.constant 0 : i32
    return %c0_i32, %c0_i32_0 : i32, i32
  }
  func.func @transform_33(%arg0: i32) -> (i32, i32, i32) {
    %c0_i32 = arith.constant 0 : i32
    %c0_i32_0 = arith.constant 0 : i32
    %c0_i32_1 = arith.constant 0 : i32
    return %arg0, %c0_i32, %c0_i32_0 : i32, i32, i32
  }
}

</mosaic_0001>

<bundles_post_ra>
// kernel: extract_features.1
= control target key start
LH: loop header
LB: loop body
LE: loop exit
PB: predicated region body
PF: predicated region fallthrough
CT: control target
= control target key end

     0   :  { %s2834_s6 = smov 1   ;;  %s2835_s10 = smov 2   ;;  %s3351_s0 = inlined_call_operand.smem [shape: u32[34], index: -1, kind: input, shape index: {}] }
   0x1   :  { %s2893_s5 = sld [smem:[%s3351_s0]]   ;;  %s2836_s14 = smov 3  }
   0x2   :  { %s2898_s9 = sld [smem:[%s3351_s0 + %s2834_s6]]   ;;  %s2837_s18 = smov 4  }
   0x3   :  { %s2903_s13 = sld [smem:[%s3351_s0 + %s2835_s10]]   ;;  %s2838_s22 = smov 5  }
   0x4   :  { %s2908_s17 = sld [smem:[%s3351_s0 + %s2836_s14]]   ;;  %s2839_s26 = smov 6  }
   0x5   :  { %s2913_s21 = sld [smem:[%s3351_s0 + %s2837_s18]]   ;;  %s2840_s30 = smov 7  }
   0x6   :  { %s2918_s25 = sld [smem:[%s3351_s0 + %s2838_s22]]   ;;  %s2841_s4 = smov 8  }
   0x7   :  { %3374 = sst [smem:[#allocation5_spill]] %s2893_s5  ;;  %s2842_s10 = smov 9  }
   0x8   :  { %3375 = sst [smem:[#allocation6_spill]] %s2898_s9  ;;  %s2843_s15 = smov 10  }
   0x9   :  { %3376 = sst [smem:[#allocation7_spill]] %s2903_s13  ;;  %s2844_s20 = smov 11  }
   0xa   :  { %s2923_s29 = sld [smem:[%s3351_s0 + %s2839_s26]]   ;;  %s2845_s26 = smov 12  }
   0xb   :  { %s2928_s3 = sld [smem:[%s3351_s0 + %s2840_s30]]   ;;  %s2846_s1 = smov 13  }
   0xc   :  { %s2933_s8 = sld [smem:[%s3351_s0 + %s2841_s4]]   ;;  %s2847_s7 = smov 14  }
   0xd   :  { %s2938_s14 = sld [smem:[%s3351_s0 + %s2842_s10]]   ;;  %s2849_s22 = smov 16  }
   0xe   :  { %s2943_s19 = sld [smem:[%s3351_s0 + %s2843_s15]]   ;;  %s2848_s15 = smov 15  }
   0xf   :  { %s2948_s24 = sld [smem:[%s3351_s0 + %s2844_s20]]   ;;  %s2850_s28 = smov 17  }
  0x10   :  { %s2953_s30 = sld [smem:[%s3351_s0 + %s2845_s26]]  }
  0x11   :  { %3377 = sst [smem:[#allocation8_spill]] %s2928_s3 }
  0x12   :  { %3378 = sst [smem:[#allocation9_spill]] %s2933_s8 }
  0x13   :  { %s2958_s6 = sld [smem:[%s3351_s0 + %s2846_s1]]  }
  0x14   :  { %s2963_s12 = sld [smem:[%s3351_s0 + %s2847_s7]]   ;;  %s2851_s7 = smov 18  }
  0x15   :  { %s2968_s20 = sld [smem:[%s3351_s0 + %s2848_s15]]   ;;  %s2852_s15 = smov 19  }
  0x16   :  { %s2973_s27 = sld [smem:[%s3351_s0 + %s2849_s22]]   ;;  %s2853_s22 = smov 20  }
  0x17   :  { %s2978_s4 = sld [smem:[%s3351_s0 + %s2850_s28]]   ;;  %s2854_s28 = smov 21  }
  0x19   :  { %3379 = sst [smem:[#allocation10_spill]] %s2958_s6 }
  0x1a   :  { %3380 = sst [smem:[#allocation11_spill]] %s2963_s12 }
  0x1b   :  { %s2983_s12 = sld [smem:[%s3351_s0 + %s2851_s7]]   ;;  %s2855_s7 = smov 22  }
  0x1c   :  { %3381 = sst [smem:[#allocation12_spill]] %s2973_s27 }
  0x1d   :  { %3382 = sst [smem:[#allocation13_spill]] %s2978_s4 }
  0x1e   :  { %s2988_s6 = sld [smem:[%s3351_s0 + %s2852_s15]]   ;;  %s2856_s15 = smov 23  }
  0x1f   :  { %s2993_s27 = sld [smem:[%s3351_s0 + %s2853_s22]]   ;;  %s2857_s22 = smov 24  }
  0x20   :  { %s2998_s4 = sld [smem:[%s3351_s0 + %s2854_s28]]   ;;  %s2858_s28 = smov 25  }
  0x21   :  { %3383 = sst [smem:[#allocation14_spill]] %s2983_s12 }
  0x22   :  { %s3003_s12 = sld [smem:[%s3351_s0 + %s2855_s7]]   ;;  %s2859_s7 = smov 26  }
  0x24   :  { %3384 = sst [smem:[#allocation15_spill]] %s2988_s6 }
  0x25   :  { %3385 = sst [smem:[#allocation16_spill]] %s2993_s27 }
  0x26   :  { %3386 = sst [smem:[#allocation17_spill]] %s2998_s4 }
  0x27   :  { %s3008_s6 = sld [smem:[%s3351_s0 + %s2856_s15]]   ;;  %s2860_s15 = smov 27  }
  0x28   :  { %3387 = sst [smem:[#allocation18_spill]] %s3003_s12 }
  0x29   :  { %s3013_s27 = sld [smem:[%s3351_s0 + %s2857_s22]]   ;;  %s2861_s22 = smov 28  }
  0x2a   :  { %s3018_s4 = sld [smem:[%s3351_s0 + %s2858_s28]]   ;;  %s2862_s28 = smov 29  }
  0x2b   :  { %s3023_s12 = sld [smem:[%s3351_s0 + %s2859_s7]]   ;;  %s2863_s7 = smov 30  }
  0x2d   :  { %3388 = sst [smem:[#allocation19_spill]] %s3008_s6 }
  0x2e   :  { %s3028_s6 = sld [smem:[%s3351_s0 + %s2860_s15]]   ;;  %s2864_s15 = smov 31  }
  0x2f   :  { %3389 = sst [smem:[#allocation20_spill]] %s3013_s27 }
  0x30   :  { %3390 = sst [smem:[#allocation21_spill]] %s3018_s4 }
  0x31   :  { %3391 = sst [smem:[#allocation22_spill]] %s3023_s12 }
  0x32   :  { %s3033_s27 = sld [smem:[%s3351_s0 + %s2861_s22]]   ;;  %s2865_s22 = smov 32  }
  0x33   :  { %s3038_s4 = sld [smem:[%s3351_s0 + %s2862_s28]]   ;;  %s2866_s28 = smov 33  }
  0x34   :  { %3392 = sst [smem:[#allocation23_spill]] %s3028_s6 }
  0x35   :  { %s3043_s12 = sld [smem:[%s3351_s0 + %s2863_s7]]  }
  0x36   :  { %s3048_s6 = sld [smem:[%s3351_s0 + %s2864_s15]]  }
  0x38   :  { %3393 = sst [smem:[#allocation24_spill]] %s3033_s27 }
  0x39   :  { %3394 = sst [smem:[#allocation25_spill]] %s3038_s4 }
  0x3a   :  { %s3053_s27 = sld [smem:[%s3351_s0 + %s2865_s22]]  }
  0x3b   :  { %3395 = sst [smem:[#allocation26_spill]] %s3043_s12 }
  0x3c   :  { %3396 = sst [smem:[#allocation27_spill]] %s3048_s6 }
  0x3d   :  { %s3058_s4 = sld [smem:[%s3351_s0 + %s2866_s28]]  }
  0x3e   :  { %72 = vsyncpa [#allocation3], 0 }
  0x3f   :  { %74 = vsyncpa [#allocation3 + $0x1], 0  ;;  %s3060_s7 = smov 0   ;;  %s3062_s10 = smov 0  }
  0x40   :  { %s3064_s11 = smov 0   ;;  %s3066_s15 = smov 0  }
  0x41 LB: > { %s3397_s9 = sld [smem:[#allocation6_spill]]  ;;  %s3081_s0 = sadd.s32 4294967295, %s2832_s15   ;;  %s2824_s10 = sphi %s3062_s10, %s3438_s10   ;;  %s2820_s7 = sphi %s3060_s7, %s3437_s7   ;;  %s2832_s15 = sphi %s3066_s15, %s3440_s15   ;;  %s2828_s11 = sphi %s3064_s11, %s3439_s11  }
  0x42   : > { %s3398_s3 = sld [smem:[#allocation8_spill]]  ;;  %s2392_s16 = sadd.s32 4294967294, %s2832_s15  }
  0x43   : > { %s3085_s18 = sadd.s32 1, %s2832_s15   ;;  %s785_s22 = sadd.s32 1, %s2828_s11 }
  0x44   : > { %s782_s23 = ssub.s32 %s2832_s15, %s3085_s18  ;;  %p795_p0 = scmp.ne.s32.totalorder %s2828_s11, %s2824_s10 }
  0x45   : > { %p783_p1 = scmp.eq.s32.totalorder %s782_s23, 0  ;;  %p796_p2 = scmp.eq.s32.totalorder %s3081_s0, 1 }
  0x46   : > { %p801_p3 = scmp.ne.s32.totalorder %s2824_s10, %s2820_s7  ;;  %p802_p4 = scmp.eq.s32.totalorder %s2392_s16, 1 }
  0x47   : > { %s3096_s26 = scalar_select %p783_p1, %s2828_s11, %s785_s22  }
  0x48   : > { %p3098_p5 = por %p796_p2, %p795_p0  ;;  %p3102_p6 = por %p802_p4, %p801_p3 }
  0x49   : > { %3399 = sst [smem:[#allocation28_spill]] %s3096_s26  ;;  %p2395_p7 = scmp.ge.s32.totalorder %s2832_s15, 1 }
  0x4a   : > { %p924_p8 = scmp.lt.s32.totalorder %s2832_s15, 3 }
  0x4c   : > { %p925_p9 = pnand %p2395_p7, %p924_p8 }
  0x4d   : > { %s3402_s5 = sld [smem:[#allocation5_spill]] (!%p925_p9)  ;;  %p1008_p10 = scmp.lt.s32.totalorder (!%p925_p9), %s3081_s0, 1 }
  0x4e   : > { %928 = sbr.rel (%p925_p9) target bundleno = 5297 (0x14b1), region = 152  ;;  %s2867_s23 = smov (!%p925_p9), 123  }
  0x4f   : > { %s2868_s26 = smov (!%p925_p9), 5   ;;  %s3403_s13 = sld [smem:[#allocation7_spill]] (!%p925_p9) }
  0x50   : > { %s3404_s8 = sld [smem:[#allocation9_spill]] (!%p925_p9) }
  0x51   : > { %s3434_s12 = sld [smem:[#allocation26_spill]] (!%p925_p9) }
  0x52   : > { %s3435_s6 = sld [smem:[#allocation27_spill]] (!%p925_p9) }
  0x53   : > { %s1009_s2 = scalar_select %p1008_p10, %s3081_s0, 1  ;;  %vm1025_vm0 = vcmask 1046528   ;;  %v2401_v7 = vld [vmem:[%s3397_s9] sm:$0xf]  ;;  %v2555_v8 = vld [vmem:[%s3397_s9] sm:$0x10] }
  0x54   : > { %v2402_v9 = vor.u32 %v2555_v8, %v2401_v7  ;;  %vm1053_vm1 = vcmask 1044480   ;;  %vm1049_vm2 = vcmask 80896   ;;  %vm1035_vm3 = vcmask 39936   ;;  %v2563_v54 = vld [vmem:[%s2908_s17 + $0x38] sm:$0xff]  ;;  %v2562_v56 = vld [vmem:[%s2908_s17 + $0x30] sm:$0xff]  ;;  %v2561_v59 = vld [vmem:[%s2908_s17 + $0x28] sm:$0xff] }
  0x55   : > { %s2554_s16 = sshll.u32 %s1009_s2, 4  ;;  %v2691_v21 = vld [vmem:[%s3403_s13] ss:$0 sm:$0xff]  ;;  %1217 = vmatpush.bf16.msra.mxu2 %v2563_v54  ;;  %v2559_v63 = vld [vmem:[%s2908_s17 + $0x18] sm:$0xff]  ;;  %v2557_v7 = vld [vmem:[%s2908_s17 + $0x8] sm:$0xff]  ;;  %vm1133_vm4 = vcmask 261120  }
  0x56   : > { %s1012_s22 = scalar_lea.vmem %s3402_s5, %s2554_s16  ;;  %v1055_v10 = vsel %vm1053_vm1, %v2402_v9, 0  ;;  %v2560_v62 = vld [vmem:[%s2908_s17 + $0x20] sm:$0xff]  ;;  %s3359_s2 = smov 64   ;;  %vm1144_vm5 = vcmask 523264   ;;  %vm1146_vm6 = vcmask 785408   ;;  %vm1356_vm11 = vcmask 64512  }
  0x57   : > { %v1014_v0 = vld [vmem:[%s1012_s22] sm:$0xff]  ;;  %v1015_v1 = vld [vmem:[%s1012_s22 + $0x8] sm:$0x3]  ;;  %1100 = vmatpush.bf16.msra.mxu1 %v1055_v10  ;;  %1064 = vmatpush.bf16.msra.mxu0 %v1055_v10  ;;  %s3358_s16 = smov 88   ;;  %s3370_s22 = smov 96   ;;  %vm1394_vm12 = vcmask 1043456  }
  0x58   : > { %v2676_v2 = vpack.i.bf16 %v1015_v1, %v1014_v0  ;;  %v1026_v3 = vrot.slane %v1014_v0, 1  ;;  %v1027_v4 = vrot.slane %v1015_v1, 1  ;;  %v1038_v11 = vpack.c.bf16 %v1015_v1, %v1014_v0  ;;  %v2558_v1 = vld [vmem:[%s2908_s17 + $0x10] sm:$0xff]  ;;  %s3417_s5 = smov 80  }
  0x59   : > { %1218 = vmatpush.bf16.msra.mxu2 %v2562_v56  ;;  %vm1595_vm13 = vcmask 130048   ;;  %vm1597_vm14 = vcmask 195584  }
  0x5a   : > { %2677 = vrot.lane.b32.xlu0 %v2676_v2, %s2867_s23  ;;  %v1028_v5 = vsel %vm1025_vm0, %v1026_v3, %v1027_v4  ;;  %2403 = vmatmul.msk.bf16.vlgmr.msra.gmra.mxu0 %vm1049_vm2, %v1038_v11  ;;  %s3365_s23 = smov 80  }
  0x5b   : > { %v2681_v6 = vpack.i.bf16 %v1027_v4, %v1028_v5 }
  0x5d   : > { %1219 = vmatpush.bf16.msra.mxu2 %v2561_v59 }
  0x61   : > { %1220 = vmatpush.bf16.msra.mxu2 %v2560_v62 }
  0x62   : > { %2682 = vrot.lane.b32.xlu0 %v2681_v6, %s2868_s26  ;;  %s2869_s26 = smov 32  }
  0x65   : > { %1221 = vmatpush.bf16.msra.mxu2 %v2559_v63 }
  0x69   : > { %1222 = vmatpush.bf16.msra.mxu2 %v2558_v1 }
  0x6d   : > { %1223 = vmatpush.bf16.msra.mxu2 %v2557_v7 }
  0xcc   : > { %v2678_v12 = vpop.permute.xlu0 %2677 }
  0xcd   : > { %v2680_v14 = vunpack.i.h.bf16 %v2678_v12  ;;  %v2679_v15 = vunpack.i.l.bf16 %v2678_v12 }
  0xd4   : > { %v2683_v13 = vpop.permute.xlu0 %2682 }
  0xd5   : > { %v2685_v16 = vunpack.i.h.bf16 %v2683_v13  ;;  %v2684_v17 = vunpack.i.l.bf16 %v2683_v13 }
  0xd7   : > { %v1036_v18 = vsel %vm1035_vm3, %v2679_v15, %v2684_v17  ;;  %v1037_v19 = vsel %vm1035_vm3, %v2680_v14, %v2685_v16  ;;  %v1066_v45 = vpop.f32.mrf.mxu0 }
  0xd8   : > { %v1089_v20 = vpack.c.bf16 %v1037_v19, %v1036_v18  ;;  %v1067_v47 = vadd.f32 %v2691_v21, %v1066_v45  ;;  %v2556_v18 = vld [vmem:[%s2908_s17] sm:$0xff] }
  0xd9   : > { %1224 = vmatpush.bf16.msra.mxu2 %v2556_v18 }
  0xda   : > { %2404 = vmatmul.msk.bf16.vlgmr.msra.gmra.mxu1 %vm1049_vm2, %v1089_v20  ;;  %v1073_v49 = vmul.f32 0.044715, %v1067_v47  ;;  %v1071_v3 = vmul.f32 0.5, %v1067_v47 }
  0xdc   : > { %v1075_v51 = vmul.f32 %v1073_v49, %v1067_v47  ;;  %v2565_v49 = vld [vmem:[%s3398_s3 + $0x8] sm:$0xff] }
  0xdd   : > { %1308 = vmatpush.bf16.msra.mxu3 %v2565_v49 }
  0xde   : > { %v1077_v53 = vmul.f32 %v1075_v51, %v1067_v47  ;;  %v2567_v51 = vld [vmem:[%s2938_s14 + $0x8] sm:$0xff] }
  0xdf   : > { %v1068_v46 = vpop.f32.mrf.mxu0  ;;  %1345 = vmatpush.bf16.msrb.mxu0 %v2567_v51 }
  0xe0   : > { %v1069_v48 = vadd.f32 %v2691_v21, %v1068_v46  ;;  %v1079_v57 = vadd.f32 %v1077_v53, %v1067_v47 }
  0xe2   : > { %v1074_v50 = vmul.f32 0.044715, %v1069_v48  ;;  %v1081_v60 = vmul.f32 0.7978846, %v1079_v57  ;;  %v1072_v4 = vmul.f32 0.5, %v1069_v48 }
  0xe4   : > { %v1076_v52 = vmul.f32 %v1074_v50, %v1069_v48  ;;  %v2564_v50 = vld [vmem:[%s3398_s3] sm:$0xff]  ;;  %s3361_s3 = smov 112  }
  0xe5   : > { %1309 = vmatpush.bf16.msra.mxu3 %v2564_v50 }
  0xe6   : > { %v1078_v55 = vmul.f32 %v1076_v52, %v1069_v48 }
  0xe8   : > { %v1080_v58 = vadd.f32 %v1078_v55, %v1069_v48 }
  0xea   : > { %v1082_v61 = vmul.f32 0.7978846, %v1080_v58 }
 0x157   : > { %v1102_v22 = vpop.f32.mrf.mxu1 }
 0x158   : > { %v1103_v23 = vadd.f32 %v2691_v21, %v1102_v22 }
 0x15a   : > { %v1109_v24 = vmul.f32 0.044715, %v1103_v23  ;;  %v1107_v39 = vmul.f32 0.5, %v1103_v23 }
 0x15c   : > { %v1111_v25 = vmul.f32 %v1109_v24, %v1103_v23 }
 0x15e   : > { %v1113_v26 = vmul.f32 %v1111_v25, %v1103_v23 }
 0x15f   : > { %v1104_v27 = vpop.f32.mrf.mxu1 }
 0x160   : > { %v1105_v28 = vadd.f32 %v2691_v21, %v1104_v27  ;;  %v1115_v29 = vadd.f32 %v1113_v26, %v1103_v23  ;;  %v2692_v23 = vld [vmem:[%s2913_s21] ss:$0 sm:$0xff] }
 0x162   : > { %v1110_v30 = vmul.f32 0.044715, %v1105_v28  ;;  %v1117_v32 = vmul.f32 0.7978846, %v1115_v29  ;;  %v1108_v40 = vmul.f32 0.5, %v1105_v28 }
 0x164   : > { %v1112_v31 = vmul.f32 %v1110_v30, %v1105_v28  ;;  %2712 = vtanh.f32 %v1117_v32 }
 0x166   : > { %v1114_v33 = vmul.f32 %v1112_v31, %v1105_v28 }
 0x168   : > { %v1116_v34 = vadd.f32 %v1114_v33, %v1105_v28 }
 0x16a   : > { %v1118_v35 = vmul.f32 0.7978846, %v1116_v34  ;;  %v2713_v36 = vpop.eup %2712 }
 0x16b   : > { %v1121_v37 = vadd.f32 1.0, %v2713_v36 }
 0x16c   : > { %2714 = vtanh.f32 %v1118_v35 }
 0x16d   : > { %v1123_v42 = vmul.f32 %v1121_v37, %v1107_v39  ;;  %2716 = vtanh.f32 %v1081_v60  ;;  %v2871_v37 = vmov 32.0  }
 0x16e   : > { %2718 = vtanh.f32 %v1082_v61  ;;  %v2693_v61 = vld [vmem:[%s2918_s25] ss:$0 sm:$0xff] }
 0x172   : > { %v2715_v38 = vpop.eup %2714 }
 0x173   : > { %v1122_v41 = vadd.f32 1.0, %v2715_v38  ;;  %v2717_v0 = vpop.eup %2716 }
 0x174   : > { %v2719_v2 = vpop.eup %2718  ;;  %v1085_v5 = vadd.f32 1.0, %v2717_v0  ;;  %v2694_v0 = vld [vmem:[%s2923_s29] ss:$0 sm:$0xff] }
 0x175   : > { %v1124_v43 = vmul.f32 %v1122_v41, %v1108_v40  ;;  %v1086_v6 = vadd.f32 1.0, %v2719_v2 }
 0x176   : > { %v1087_v9 = vmul.f32 %v1085_v5, %v1071_v3  ;;  %v2695_v5 = vld [vmem:[%s3404_s8] ss:$0 sm:$0xff]  ;;  %s3419_s8 = smov 72  }
 0x177   : > { %v2686_v44 = vpack.i.bf16 %v1124_v43, %v1123_v42  ;;  %v1088_v10 = vmul.f32 %v1086_v6, %v1072_v4  ;;  %v2566_v4 = vld [vmem:[%s2938_s14] sm:$0xff] }
 0x178   : > { %1346 = vmatpush.bf16.msrb.mxu0 %v2566_v4 }
 0x179   : > { %2687 = vrot.lane.b32.xlu1 %v2686_v44, %s2869_s26  ;;  %s2875_s26 = smov 120  }
 0x1eb   : > { %v2688_v8 = vpop.permute.xlu1 %2687 }
 0x1ec   : > { %v2690_v11 = vunpack.i.h.bf16 %v2688_v8  ;;  %v2689_v12 = vunpack.i.l.bf16 %v2688_v8 }
 0x1ee   : > { %v1135_v13 = vsel %vm1133_vm4, %v1088_v10, %v2690_v11  ;;  %v1134_v14 = vsel %vm1133_vm4, %v1087_v9, %v2689_v12  ;;  %v2696_v10 = vld [vmem:[%s2943_s19] ss:$0 sm:$0xff] }
 0x1ef   : > { %v1138_v15 = vrot.slane %v1134_v14, 1  ;;  %v1139_v16 = vrot.slane %v1135_v13, 1 }
 0x1f1   : > { %v1140_v17 = vsel %vm1025_vm0, %v1138_v15, %v1139_v16 }
 0x1f2   : > { %1141 = vrot.lane.b32.xlu1 %v1140_v17, %s3359_s2 }
 0x264   : > { %v1142_v19 = vpop.permute.xlu1 %1141 }
 0x265   : > { %v1145_v20 = vsel %vm1144_vm5, %v1134_v14, %v1142_v19 }
 0x266   : > { %v1147_v21 = vsel %vm1146_vm6, %v1145_v20, %v1142_v19 }
 0x267   : > { %v1148_v22 = vpack.c.bf16 %v1147_v21, %v1147_v21 }
 0x269   : > { %1225 = vmatmul.bf16.vlgmr.msra.gmra.mxu2 %v1148_v22 }
 0x2ec   : > { %v1226_v24 = vpop.f32.mrf.mxu2 }
 0x2ed   : > { %v1227_v25 = vadd.f32 %v2692_v23, %v1226_v24 }
 0x2ef   : > { %v1231_v26 = vmul.f32 0.044715, %v1227_v25  ;;  %v1230_v33 = vmul.f32 0.5, %v1227_v25 }
 0x2f1   : > { %v1232_v27 = vmul.f32 %v1231_v26, %v1227_v25 }
 0x2f3   : > { %v1233_v28 = vmul.f32 %v1232_v27, %v1227_v25 }
 0x2f4   : > { %v1228_v29 = vpop.f32.mrf.mxu2 }
 0x2f5   : > { %v1234_v30 = vadd.f32 %v1233_v28, %v1227_v25 }
 0x2f7   : > { %v1235_v31 = vmul.f32 0.7978846, %v1234_v30 }
 0x2f9   : > { %2720 = vtanh.f32 %v1235_v31 }
 0x2fa   : > { %2722 = vrcp.f32 %v2871_v37 }
 0x2ff   : > { %v2721_v32 = vpop.eup %2720 }
 0x300   : > { %v1237_v34 = vadd.f32 1.0, %v2721_v32  ;;  %v2723_v38 = vpop.eup %2722 }
 0x301   : > { %v1245_v39 = vmul.f32 32.0, %v2723_v38  ;;  %vm1249_vm7 = vweird.f32 %v2723_v38 }
 0x302   : > { %v1238_v35 = vmul.f32 %v1237_v34, %v1230_v33 }
 0x303   : > { %v1246_v40 = vsub.f32 1.0, %v1245_v39 }
 0x304   : > { %v1241_v36 = vsel %vm1133_vm4, %v1238_v35, 0.0 }
 0x305   : > { %1242 = vadd.xlane.f32.xlu2 %v1241_v36  ;;  %v1247_v41 = vmul.f32 %v2723_v38, %v1246_v40 }
 0x307   : > { %v1248_v42 = vadd.f32 %v2723_v38, %v1247_v41 }
 0x309   : > { %v3130_v43 = vsel %vm1249_vm7, %v2723_v38, %v1248_v42 }
 0x378   : > { %v1243_v44 = vpop.xlane.xlu2 %1242 }
 0x379   : > { %v1251_v45 = vmul.f32 %v3130_v43, %v1243_v44 }
 0x37b   : > { %v1252_v46 = vsub.f32 %v1238_v35, %v1251_v45 }
 0x37d   : > { %v1253_v47 = vmul.f32 %v1252_v46, %v1252_v46 }
 0x37f   : > { %v1254_v48 = vsel %vm1133_vm4, %v1253_v47, 0.0 }
 0x380   : > { %1255 = vadd.xlane.f32.xlu2 %v1254_v48 }
 0x3f3   : > { %v1256_v52 = vpop.xlane.xlu2 %1255 }
 0x3f4   : > { %v1257_v53 = vmul.f32 %v1256_v52, %v3130_v43 }
 0x3f6   : > { %v1258_v54 = vadd.f32 1e-05, %v1257_v53 }
 0x3f8   : > { %2724 = vrsqrt.f32 %v1258_v54  ;;  %vm1265_vm9 = vweird.f32 %v1258_v54 }
 0x3fe   : > { %v2725_v55 = vpop.eup %2724 }
 0x3ff   : > { %v1260_v56 = vmul.f32 %v2725_v55, %v1258_v54  ;;  %vm1266_vm8 = vweird.f32 %v2725_v55 }
 0x400   : > { %vm1267_vm10 = vmor %vm1265_vm9, %vm1266_vm8 }
 0x401   : > { %v1261_v57 = vmul.f32 %v2725_v55, %v1260_v56 }
 0x403   : > { %v1262_v58 = vmul.f32 0.5, %v1261_v57 }
 0x405   : > { %v1263_v59 = vsub.f32 1.5, %v1262_v58 }
 0x407   : > { %v1264_v60 = vmul.f32 %v2725_v55, %v1263_v59 }
 0x409   : > { %v1268_v62 = vsel %vm1267_vm10, %v2725_v55, %v1264_v60 }
 0x40a   : > { %v1269_v63 = vmul.f32 %v1268_v62, %v1252_v46 }
 0x40c   : > { %v1273_v1 = vmul.f32 %v2693_v61, %v1269_v63 }
 0x40e   : > { %v1277_v2 = vadd.f32 %v2694_v0, %v1273_v1 }
 0x410   : > { %v1278_v3 = vpack.c.bf16 %v1277_v2, %v1277_v2 }
 0x412   : > { %2445 = vmatmul.msk.bf16.vlgmr.msra.gmra.mxu3 %vm1133_vm4, %v1278_v3 }
 0x495   : > { %v1311_v6 = vpop.f32.mrf.mxu3 }
 0x496   : > { %v3143_v7 = vadd.f32 %v2695_v5, %v1311_v6 }
 0x498   : > { %v1315_v8 = vpack.c.bf16 %v3143_v7, %v3143_v7 }
 0x49a   : > { %2454 = vmatmul.msk.bf16.vlgmr.msrb.gmra.mxu0 %vm1133_vm4, %v1315_v8 }
 0x49d   : > { %v1313_v9 = vpop.f32.mrf.mxu3 }
 0x517   : > { %v1348_v11 = vpop.f32.mrf.mxu0 }
 0x518   : > { %v1349_v12 = vadd.f32 %v2696_v10, %v1348_v11 }
 0x51a   : > { %v3149_v13 = vpack.c.bf16 %v1349_v12, %v1349_v12 }
 0x51c   : > { %1413 = vrot.lane.b32.xlu2 %v3149_v13, %s3358_s16  ;;  %1354 = vrot.lane.b32.xlu0 %v3149_v13, %s3370_s22  ;;  %s3369_s16 = smov 104   ;;  %s3413_s22 = sld [smem:[#allocation18_spill]] }
 0x51f   : > { %v1350_v14 = vpop.f32.mrf.mxu0 }
 0x524   : > { %1389 = vrot.lane.b32.xlu0 %v3149_v13, %s3359_s2  ;;  %s3360_s2 = smov 72  }
 0x52c   : > { %1470 = vrot.lane.b32.xlu0 %v3149_v13, %s3365_s23  ;;  %s3367_s23 = smov 16  }
 0x534   : > { %1411 = vrot.lane.b32.xlu0 %v3149_v13, %s2875_s26 }
 0x53c   : > { %1468 = vrot.lane.b32.xlu0 %v3149_v13, %s3361_s3  ;;  %s3363_s3 = smov 56  }
 0x544   : > { %1525 = vrot.lane.b32.xlu0 %v3149_v13, %s3369_s16  ;;  %s3408_s16 = sld [smem:[#allocation12_spill]] }
 0x576   : > { %v1414_v15 = vpop.permute.xlu2 %1413 }
 0x577   : > { %v1419_v16 = vsel %vm1356_vm11, %v1414_v15, 0 }
 0x578   : > { %1428 = vmatpush.bf16.xpose.msra.mxu0 %v1419_v16 }
 0x58e   : > { %v1355_v17 = vpop.permute.xlu0 %1354 }
 0x58f   : > { %v1361_v18 = vsel %vm1356_vm11, %v1355_v17, 0 }
 0x590   : > { %1370 = vmatpush.bf16.xpose.msrb.mxu1 %v1361_v18 }
 0x596   : > { %v1390_v19 = vpop.permute.xlu0 %1389 }
 0x597   : > { %2455 = vmatmul.msk.bf16.vlgmr.msrb.gmra.mxu1 %vm1356_vm11, %v3149_v13  ;;  %v1396_v20 = vsel %vm1394_vm12, %v1390_v19, 0 }
 0x598   : > { %1405 = vmatpush.bf16.msrb.mxu3 %v1396_v20 }
 0x59e   : > { %v1471_v21 = vpop.permute.xlu0 %1470 }
 0x59f   : > { %v1476_v22 = vsel %vm1356_vm11, %v1471_v21, 0 }
 0x5a0   : > { %1485 = vmatpush.bf16.xpose.msra.mxu3 %v1476_v22 }
 0x5a6   : > { %v1412_v23 = vpop.permute.xlu0 %1411 }
 0x5a7   : > { %2457 = vmatmul.msk.bf16.vlgmr.msra.gmra.mxu0 %vm1356_vm11, %v1412_v23 }
 0x5ae   : > { %v1469_v38 = vpop.permute.xlu0 %1468 }
 0x5b6   : > { %v1526_v45 = vpop.permute.xlu0 %1525 }
 0x614   : > { %v1372_v24 = vpop.f32.mrf.mxu1 }
 0x615   : > { %v1376_v25 = vmul.f32 0.35355338, %v1372_v24 }
 0x617   : > { %v1377_v26 = vsel %vm1356_vm11, %v1376_v25, -inf }
 0x618   : > { %1378 = vmax.xlane.f32.xlu1 %v1377_v26 }
 0x61c   : > { %v1374_v27 = vpop.f32.mrf.mxu1 }
 0x624   : > { %v1430_v28 = vpop.f32.mrf.mxu0 }
 0x625   : > { %v1434_v35 = vmul.f32 0.35355338, %v1430_v28 }
 0x627   : > { %v1435_v36 = vsel %vm1356_vm11, %v1434_v35, -inf }
 0x62c   : > { %v1432_v29 = vpop.f32.mrf.mxu0 }
 0x62d   : > { %v2569_v29 = vld [vmem:[%s2948_s24 + $0x8] sm:$0xff] }
 0x68b   : > { %v1379_v30 = vpop.xlane.xlu1 %1378 }
 0x68c   : > { %v1380_v31 = vsub.f32 %v1376_v25, %v1379_v30 }
 0x68e   : > { %v1381_v32 = vmul.f32 1.442695, %v1380_v31 }
 0x690   : > { %2726 = vpow2.f32 %v1381_v32 }
 0x696   : > { %v2727_v33 = vpop.eup %2726 }
 0x697   : > { %v1383_v34 = vsel %vm1356_vm11, %v2727_v33, 0.0 }
 0x698   : > { %1384 = vadd.xlane.f32.xlu2 %v1383_v34 }
 0x6b0   : > { %1527 = vrot.lane.b32.xlu2 %v3149_v13, %s3360_s2  ;;  %s3362_s2 = smov 40  }
 0x6d9   : > { %1436 = vmax.xlane.f32.xlu2 %v1435_v36 }
 0x70b   : > { %v1385_v37 = vpop.xlane.xlu2 %1384 }
 0x70c   : > { %2728 = vrcp.f32 %v1385_v37 }
 0x712   : > { %v2729_v39 = vpop.eup %2728 }
 0x713   : > { %v1387_v40 = vmul.f32 %v2729_v39, %v2727_v33  ;;  %v1528_v41 = vpop.permute.xlu2 %1527  ;;  %v2568_v33 = vld [vmem:[%s2948_s24] sm:$0xff] }
 0x714   : > { %v1533_v42 = vsel %vm1356_vm11, %v1528_v41, 0  ;;  %v2697_v41 = vld [vmem:[%s2953_s30] ss:$0 sm:$0xff] }
 0x715   : > { %1542 = vmatpush.bf16.xpose.msrb.mxu0 %v1533_v42  ;;  %v1388_v44 = vpack.c.bf16 %v1387_v40, %v1387_v40 }
 0x717   : > { %2456 = vmatmul.msk.bf16.vlgmr.msrb.gmra.mxu3 %vm1356_vm11, %v1388_v44 }
 0x718   : > { %1629 = vmatpush.bf16.msrb.mxu3 %v2569_v29 }
 0x71c   : > { %2461 = vmatmul.msk.bf16.vlgmr.msrb.gmra.mxu0 %vm1356_vm11, %v1526_v45  ;;  %1630 = vmatpush.bf16.msrb.mxu3 %v2568_v33 }
 0x727   : > { %2459 = vmatmul.msk.bf16.vlgmr.msra.gmra.mxu3 %vm1356_vm11, %v1469_v38 }
 0x74c   : > { %v1437_v46 = vpop.xlane.xlu2 %1436 }
 0x74d   : > { %v1438_v47 = vsub.f32 %v1434_v35, %v1437_v46 }
 0x74f   : > { %v1439_v48 = vmul.f32 1.442695, %v1438_v47 }
 0x751   : > { %2730 = vpow2.f32 %v1439_v48 }
 0x757   : > { %v2731_v49 = vpop.eup %2730 }
 0x758   : > { %v1441_v50 = vsel %vm1356_vm11, %v2731_v49, 0.0 }
 0x759   : > { %1442 = vadd.xlane.f32.xlu1 %v1441_v50 }
 0x799   : > { %v1544_v51 = vpop.f32.mrf.mxu0 }
 0x79a   : > { %v1548_v52 = vmul.f32 0.35355338, %v1544_v51  ;;  %v3182_v53 = vpop.f32.mrf.mxu3 }
 0x79c   : > { %v1549_v54 = vsel %vm1356_vm11, %v1548_v52, -inf }
 0x79d   : > { %1550 = vmax.xlane.f32.xlu0 %v1549_v54  ;;  %v2570_v54 = vld [vmem:[%s2968_s20] sm:$0xff] }
 0x7a1   : > { %v1546_v55 = vpop.f32.mrf.mxu0 }
 0x7a2   : > { %v1409_v56 = vpop.f32.mrf.mxu3 }
 0x7aa   : > { %v1487_v57 = vpop.f32.mrf.mxu3 }
 0x7ab   : > { %v1491_v58 = vmul.f32 0.35355338, %v1487_v57 }
 0x7ad   : > { %v1492_v59 = vsel %vm1356_vm11, %v1491_v58, -inf }
 0x7ae   : > { %1493 = vmax.xlane.f32.xlu1 %v1492_v59 }
 0x7b1   : > { %1561 = vrot.lane.b32.xlu0 %v3149_v13, %s3362_s2  ;;  %s3364_s2 = smov 48  }
 0x7b2   : > { %v1489_v60 = vpop.f32.mrf.mxu3 }
 0x7c7   : > { %1447 = vrot.lane.b32.xlu1 %v3149_v13, %s3363_s3  ;;  %s3368_s3 = smov 8  }
 0x7cc   : > { %v1443_v0 = vpop.xlane.xlu1 %1442 }
 0x810   : > { %v1551_v61 = vpop.xlane.xlu0 %1550 }
 0x811   : > { %v1552_v62 = vsub.f32 %v1548_v52, %v1551_v61 }
 0x813   : > { %v1553_v63 = vmul.f32 1.442695, %v1552_v62 }
 0x815   : > { %2732 = vpow2.f32 %v1553_v63 }
 0x81b   : > { %v2733_v1 = vpop.eup %2732 }
 0x81c   : > { %v1555_v2 = vsel %vm1356_vm11, %v2733_v1, 0.0 }
 0x81d   : > { %1556 = vadd.xlane.f32.xlu1 %v1555_v2 }
 0x821   : > { %v1494_v3 = vpop.xlane.xlu1 %1493 }
 0x822   : > { %v1495_v4 = vsub.f32 %v1491_v58, %v1494_v3 }
 0x823   : > { %v1562_v11 = vpop.permute.xlu0 %1561 }
 0x824   : > { %v1496_v5 = vmul.f32 1.442695, %v1495_v4  ;;  %v1567_v15 = vsel %vm1394_vm12, %v1562_v11, 0  ;;  %v2700_v11 = vld [vmem:[%s3408_s16] ss:$0 sm:$0xff]  ;;  %s3411_s16 = sld [smem:[#allocation15_spill]] }
 0x826   : > { %2734 = vpow2.f32 %v1496_v5 }
 0x827   : > { %2736 = vrcp.f32 %v1443_v0 }
 0x82c   : > { %v2735_v6 = vpop.eup %2734 }
 0x82d   : > { %v1498_v8 = vsel %vm1356_vm11, %v2735_v6, 0.0  ;;  %v2737_v9 = vpop.eup %2736 }
 0x82e   : > { %1499 = vadd.xlane.f32.xlu2 %v1498_v8  ;;  %v1445_v10 = vmul.f32 %v2737_v9, %v2731_v49 }
 0x830   : > { %v1446_v16 = vpack.c.bf16 %v1445_v10, %v1445_v10 }
 0x839   : > { %v1448_v12 = vpop.permute.xlu1 %1447 }
 0x83a   : > { %v1453_v14 = vsel %vm1394_vm12, %v1448_v12, 0 }
 0x83b   : > { %1462 = vmatpush.bf16.msra.mxu1 %v1453_v14 }
 0x83e   : > { %2458 = vmatmul.msk.bf16.vlgmr.msra.gmra.mxu1 %vm1356_vm11, %v1446_v16 }
 0x83f   : > { %1576 = vmatpush.bf16.msrb.mxu1 %v1567_v15 }
 0x846   : > { %1504 = vrot.lane.b32.xlu2 %v3149_v13, %s3364_s2  ;;  %s3366_s2 = smov 24  }
 0x890   : > { %v1557_v17 = vpop.xlane.xlu1 %1556 }
 0x891   : > { %2738 = vrcp.f32 %v1557_v17 }
 0x897   : > { %v2739_v18 = vpop.eup %2738 }
 0x898   : > { %v1559_v19 = vmul.f32 %v2739_v18, %v2733_v1 }
 0x89a   : > { %v1560_v20 = vpack.c.bf16 %v1559_v19, %v1559_v19 }
 0x89c   : > { %2462 = vmatmul.msk.bf16.vlgmr.msrb.gmra.mxu1 %vm1356_vm11, %v1560_v20 }
 0x8a1   : > { %v1500_v21 = vpop.xlane.xlu2 %1499 }
 0x8a2   : > { %2740 = vrcp.f32 %v1500_v21 }
 0x8a8   : > { %v2741_v22 = vpop.eup %2740 }
 0x8a9   : > { %v1502_v23 = vmul.f32 %v2741_v22, %v2735_v6  ;;  %v1505_v24 = vpop.permute.xlu2 %1504 }
 0x8aa   : > { %v1510_v25 = vsel %vm1394_vm12, %v1505_v24, 0 }
 0x8ab   : > { %1519 = vmatpush.bf16.msrb.mxu2 %v1510_v25  ;;  %v1503_v26 = vpack.c.bf16 %v1502_v23, %v1502_v23 }
 0x8ae   : > { %2460 = vmatmul.msk.bf16.vlgmr.msrb.gmra.mxu2 %vm1356_vm11, %v1503_v26 }
 0x8bb   : > { %v1464_v13 = vpop.f32.mrf.mxu1 }
 0x8bc   : > { %1583 = vrot.lane.b32.xlu0 %v1464_v13, %s3368_s3  ;;  %s3407_s3 = sld [smem:[#allocation13_spill]] }
 0x8c2   : > { %v2575_v6 = vld [vmem:[%s3407_s3 + $0x18] sm:$0xff]  ;;  %v2574_v8 = vld [vmem:[%s3407_s3 + $0x10] sm:$0xff]  ;;  %v2573_v9 = vld [vmem:[%s3407_s3 + $0x8] sm:$0xff] }
 0x8c3   : > { %v1466_v27 = vpop.f32.mrf.mxu1  ;;  %1759 = vmatpush.bf16.msra.mxu0 %v2575_v6  ;;  %v2572_v10 = vld [vmem:[%s3407_s3] sm:$0xff]  ;;  %s3416_s3 = smov 104  }
 0x8c7   : > { %1760 = vmatpush.bf16.msra.mxu0 %v2574_v8 }
 0x8cb   : > { %1761 = vmatpush.bf16.msra.mxu0 %v2573_v9 }
 0x8cf   : > { %1762 = vmatpush.bf16.msra.mxu0 %v2572_v10 }
 0x919   : > { %v1578_v28 = vpop.f32.mrf.mxu1 }
 0x91a   : > { %1591 = vrot.lane.b32.xlu0 %v1578_v28, %s3366_s2  ;;  %s3405_s2 = sld [smem:[#allocation10_spill]] }
 0x920   : > { %v2698_v63 = vld [vmem:[%s3405_s2] ss:$0 sm:$0xff]  ;;  %s3409_s2 = sld [smem:[#allocation14_spill]] }
 0x921   : > { %v1580_v30 = vpop.f32.mrf.mxu1 }
 0x926   : > { %v2701_v26 = vld [vmem:[%s3409_s2] ss:$0 sm:$0xff]  ;;  %s3412_s2 = sld [smem:[#allocation16_spill]] }
 0x92e   : > { %v1584_v34 = vpop.permute.xlu0 %1583 }
 0x92f   : > { %v1594_v35 = vsel %vm1356_vm11, %v3182_v53, %v1584_v34  ;;  %v2571_v53 = vld [vmem:[%s2968_s20 + $0x8] sm:$0xff] }
 0x930   : > { %1699 = vmatpush.bf16.msra.mxu2 %v2571_v53 }
 0x931   : > { %v1521_v31 = vpop.f32.mrf.mxu2 }
 0x932   : > { %1587 = vrot.lane.b32.xlu2 %v1521_v31, %s3367_s23  ;;  %s3406_s23 = sld [smem:[#allocation11_spill]] }
 0x934   : > { %1700 = vmatpush.bf16.msra.mxu2 %v2570_v54 }
 0x938   : > { %v2699_v1 = vld [vmem:[%s3406_s23] ss:$0 sm:$0xff]  ;;  %s3410_s23 = sld [smem:[#allocation17_spill]] }
 0x939   : > { %v1523_v32 = vpop.f32.mrf.mxu2 }
 0x98c   : > { %v1588_v36 = vpop.permute.xlu2 %1587  ;;  %v1592_v37 = vpop.permute.xlu0 %1591 }
 0x98d   : > { %v1596_v38 = vsel %vm1595_vm13, %v1594_v35, %v1588_v36  ;;  %v2577_v36 = vld [vmem:[%s3410_s23 + $0x8] sm:$0xff] }
 0x98e   : > { %v1598_v39 = vsel %vm1597_vm14, %v1596_v38, %v1592_v37  ;;  %1831 = vmatpush.bf16.msra.mxu1 %v2577_v36  ;;  %v2576_v37 = vld [vmem:[%s3410_s23] sm:$0xff] }
 0x98f   : > { %v1599_v40 = vpack.c.bf16 %v1598_v39, %v1598_v39 }
 0x991   : > { %2471 = vmatmul.msk.bf16.vlgmr.msrb.gmra.mxu3 %vm1133_vm4, %v1599_v40 }
 0x992   : > { %1832 = vmatpush.bf16.msra.mxu1 %v2576_v37 }
 0xa14   : > { %v1632_v42 = vpop.f32.mrf.mxu3 }
 0xa15   : > { %v1633_v44 = vadd.f32 %v2697_v41, %v1632_v42 }
 0xa17   : > { %v1636_v45 = vadd.f32 %v1633_v44, %v3143_v7 }
 0xa19   : > { %v1639_v46 = vsel %vm1133_vm4, %v1636_v45, 0.0 }
 0xa1a   : > { %1640 = vadd.xlane.f32.xlu2 %v1639_v46 }
 0xa1c   : > { %v1634_v47 = vpop.f32.mrf.mxu3 }
 0xa8d   : > { %v1641_v48 = vpop.xlane.xlu2 %1640 }
 0xa8e   : > { %v1642_v49 = vmul.f32 %v1641_v48, %v3130_v43  ;;  %v2702_v48 = vld [vmem:[%s3411_s16] ss:$0 sm:$0xff]  ;;  %s3414_s16 = smov 88  }
 0xa90   : > { %v1643_v50 = vsub.f32 %v1636_v45, %v1642_v49 }
 0xa92   : > { %v1644_v51 = vmul.f32 %v1643_v50, %v1643_v50 }
 0xa94   : > { %v1645_v52 = vsel %vm1133_vm4, %v1644_v51, 0.0 }
 0xa95   : > { %1646 = vadd.xlane.f32.xlu1 %v1645_v52 }
 0xb08   : > { %v1647_v55 = vpop.xlane.xlu1 %1646 }
 0xb09   : > { %v1648_v7 = vmul.f32 %v1647_v55, %v3130_v43  ;;  %v2704_v55 = vld [vmem:[%s3413_s22] ss:$0 sm:$0xff]  ;;  %s3418_s22 = smov 112  }
 0xb0b   : > { %v1649_v56 = vadd.f32 1e-05, %v1648_v7 }
 0xb0d   : > { %2742 = vrsqrt.f32 %v1649_v56  ;;  %vm1656_vm0 = vweird.f32 %v1649_v56 }
 0xb13   : > { %v2743_v57 = vpop.eup %2742 }
 0xb14   : > { %v1651_v58 = vmul.f32 %v2743_v57, %v1649_v56  ;;  %vm1657_vm15 = vweird.f32 %v2743_v57 }
 0xb15   : > { %vm1658_vm1 = vmor %vm1656_vm0, %vm1657_vm15 }
 0xb16   : > { %v1652_v59 = vmul.f32 %v2743_v57, %v1651_v58 }
 0xb18   : > { %v1653_v60 = vmul.f32 0.5, %v1652_v59 }
 0xb1a   : > { %v1654_v61 = vsub.f32 1.5, %v1653_v60 }
 0xb1c   : > { %v1655_v62 = vmul.f32 %v2743_v57, %v1654_v61 }
 0xb1e   : > { %v1659_v0 = vsel %vm1658_vm1, %v2743_v57, %v1655_v62 }
 0xb1f   : > { %v1660_v2 = vmul.f32 %v1659_v0, %v1643_v50  ;;  %v2703_v50 = vld [vmem:[%s3412_s2] ss:$0 sm:$0xff]  ;;  %s3415_s2 = smov 96  }
 0xb21   : > { %v1664_v3 = vmul.f32 %v2698_v63, %v1660_v2 }
 0xb23   : > { %v1668_v4 = vadd.f32 %v2699_v1, %v1664_v3 }
 0xb25   : > { %v1669_v5 = vpack.c.bf16 %v1668_v4, %v1668_v4 }
 0xb27   : > { %2480 = vmatmul.msk.bf16.vlgmr.msra.gmra.mxu2 %vm1133_vm4, %v1669_v5 }
 0xbaa   : > { %v1702_v12 = vpop.f32.mrf.mxu2 }
 0xbab   : > { %v1703_v14 = vadd.f32 %v2700_v11, %v1702_v12 }
 0xbad   : > { %v1707_v15 = vmul.f32 0.044715, %v1703_v14  ;;  %v1706_v22 = vmul.f32 0.5, %v1703_v14 }
 0xbaf   : > { %v1708_v16 = vmul.f32 %v1707_v15, %v1703_v14 }
 0xbb1   : > { %v1709_v17 = vmul.f32 %v1708_v16, %v1703_v14 }
 0xbb2   : > { %v1704_v18 = vpop.f32.mrf.mxu2 }
 0xbb3   : > { %v1710_v19 = vadd.f32 %v1709_v17, %v1703_v14 }
 0xbb5   : > { %v1711_v20 = vmul.f32 0.7978846, %v1710_v19 }
 0xbb7   : > { %2744 = vtanh.f32 %v1711_v20 }
 0xbbd   : > { %v2745_v21 = vpop.eup %2744 }
 0xbbe   : > { %v1713_v23 = vadd.f32 1.0, %v2745_v21 }
 0xbc0   : > { %v1714_v24 = vmul.f32 %v1713_v23, %v1706_v22 }
 0xbc2   : > { %v1715_v25 = vpack.c.bf16 %v1714_v24, %v1714_v24 }
 0xbc4   : > { %2497 = vmatmul.msk.bf16.vlgmr.msra.gmra.mxu0 %vm1144_vm5, %v1715_v25 }
 0xc41   : > { %v1764_v13 = vpop.f32.mrf.mxu0 }
 0xc42   : > { %v1765_v27 = vadd.f32 %v2701_v26, %v1764_v13 }
 0xc44   : > { %v1768_v28 = vadd.f32 %v1765_v27, %v1668_v4 }
 0xc46   : > { %v1771_v29 = vsel %vm1133_vm4, %v1768_v28, 0.0 }
 0xc47   : > { %1772 = vadd.xlane.f32.xlu0 %v1771_v29 }
 0xc49   : > { %v1766_v30 = vpop.f32.mrf.mxu0 }
 0xcba   : > { %v1773_v31 = vpop.xlane.xlu0 %1772 }
 0xcbb   : > { %v1774_v32 = vmul.f32 %v1773_v31, %v3130_v43 }
 0xcbd   : > { %v1775_v33 = vsub.f32 %v1768_v28, %v1774_v32 }
 0xcbf   : > { %v1776_v34 = vmul.f32 %v1775_v33, %v1775_v33 }
 0xcc1   : > { %v1777_v35 = vsel %vm1133_vm4, %v1776_v34, 0.0 }
 0xcc2   : > { %1778 = vadd.xlane.f32.xlu1 %v1777_v35 }
 0xd35   : > { %v1779_v38 = vpop.xlane.xlu1 %1778 }
 0xd36   : > { %v1780_v39 = vmul.f32 %v1779_v38, %v3130_v43 }
 0xd38   : > { %v1781_v40 = vadd.f32 1e-05, %v1780_v39 }
 0xd3a   : > { %2746 = vrsqrt.f32 %v1781_v40  ;;  %vm1788_vm3 = vweird.f32 %v1781_v40 }
 0xd40   : > { %v2747_v41 = vpop.eup %2746 }
 0xd41   : > { %v1783_v42 = vmul.f32 %v2747_v41, %v1781_v40  ;;  %vm1789_vm2 = vweird.f32 %v2747_v41 }
 0xd42   : > { %vm1790_vm6 = vmor %vm1788_vm3, %vm1789_vm2 }
 0xd43   : > { %v1784_v44 = vmul.f32 %v2747_v41, %v1783_v42 }
 0xd45   : > { %v1785_v45 = vmul.f32 0.5, %v1784_v44 }
 0xd47   : > { %v1786_v46 = vsub.f32 1.5, %v1785_v45 }
 0xd49   : > { %v1787_v47 = vmul.f32 %v2747_v41, %v1786_v46 }
 0xd4b   : > { %v1791_v49 = vsel %vm1790_vm6, %v2747_v41, %v1787_v47 }
 0xd4c   : > { %v1792_v51 = vmul.f32 %v1791_v49, %v1775_v33 }
 0xd4e   : > { %v1796_v52 = vmul.f32 %v2702_v48, %v1792_v51 }
 0xd50   : > { %v3236_v53 = vadd.f32 %v2703_v50, %v1796_v52 }
 0xd52   : > { %v1801_v54 = vpack.c.bf16 %v3236_v53, %v3236_v53 }
 0xd54   : > { %2506 = vmatmul.msk.bf16.vlgmr.msra.gmra.mxu1 %vm1133_vm4, %v1801_v54 }
 0xdd1   : > { %v1834_v7 = vpop.f32.mrf.mxu1 }
 0xdd2   : > { %v1835_v56 = vadd.f32 %v2704_v55, %v1834_v7 }
 0xdd4   : > { %v3242_v57 = vpack.c.bf16 %v1835_v56, %v1835_v56 }
 0xdd6   : > { %1895 = vrot.lane.b32.xlu0 %v3242_v57, %s2875_s26  ;;  %1897 = vrot.lane.b32.xlu2 %v3242_v57, %s3414_s16  ;;  %s3423_s26 = smov 40   ;;  %s3424_s16 = sld [smem:[#allocation19_spill]] }
 0xdd7   : > { %1840 = vrot.lane.b32.xlu1 %v3242_v57, %s3415_s2  ;;  %s3425_s2 = smov 8  }
 0xdd9   : > { %v1836_v58 = vpop.f32.mrf.mxu1 }
 0xdde   : > { %2009 = vrot.lane.b32.xlu2 %v3242_v57, %s3416_s3  ;;  %s3421_s3 = smov 48  }
 0xddf   : > { %1954 = vrot.lane.b32.xlu1 %v3242_v57, %s3417_s5  ;;  %s3420_s5 = smov 64  }
 0xde7   : > { %1952 = vrot.lane.b32.xlu1 %v3242_v57, %s3418_s22  ;;  %s3426_s22 = smov 16  }
 0xdef   : > { %2011 = vrot.lane.b32.xlu1 %v3242_v57, %s3419_s8  ;;  %s3422_s8 = smov 56  }
 0xe30   : > { %v1898_v59 = vpop.permute.xlu2 %1897 }
 0xe31   : > { %v1903_v60 = vsel %vm1356_vm11, %v1898_v59, 0 }
 0xe32   : > { %1912 = vmatpush.bf16.xpose.msrb.mxu0 %v1903_v60 }
 0xe38   : > { %v2010_v5 = vpop.permute.xlu2 %2009 }
 0xe48   : > { %v1896_v61 = vpop.permute.xlu0 %1895 }
 0xe49   : > { %v1841_v62 = vpop.permute.xlu1 %1840  ;;  %2509 = vmatmul.msk.bf16.vlgmr.msrb.gmra.mxu0 %vm1356_vm11, %v1896_v61 }
 0xe4a   : > { %v1846_v63 = vsel %vm1356_vm11, %v1841_v62, 0 }
 0xe4b   : > { %1855 = vmatpush.bf16.xpose.msra.mxu3 %v1846_v63 }
 0xe51   : > { %v1955_v0 = vpop.permute.xlu1 %1954 }
 0xe52   : > { %v1960_v1 = vsel %vm1356_vm11, %v1955_v0, 0  ;;  %2507 = vmatmul.msk.bf16.vlgmr.msra.gmra.mxu3 %vm1356_vm11, %v3242_v57 }
 0xe53   : > { %1969 = vmatpush.bf16.xpose.msrb.mxu3 %v1960_v1 }
 0xe59   : > { %v1953_v2 = vpop.permute.xlu1 %1952 }
 0xe61   : > { %v2012_v3 = vpop.permute.xlu1 %2011 }
 0xe62   : > { %v2017_v4 = vsel %vm1356_vm11, %v2012_v3, 0  ;;  %2511 = vmatmul.msk.bf16.vlgmr.msrb.gmra.mxu3 %vm1356_vm11, %v1953_v2 }
 0xe63   : > { %2026 = vmatpush.bf16.xpose.msra.mxu0 %v2017_v4 }
 0xe6a   : > { %2513 = vmatmul.msk.bf16.vlgmr.msra.gmra.mxu0 %vm1356_vm11, %v2010_v5 }
 0xec6   : > { %v1914_v6 = vpop.f32.mrf.mxu0 }
 0xec7   : > { %v1918_v8 = vmul.f32 0.35355338, %v1914_v6 }
 0xec9   : > { %v1919_v9 = vsel %vm1356_vm11, %v1918_v8, -inf }
 0xeca   : > { %1920 = vmax.xlane.f32.xlu1 %v1919_v9 }
 0xece   : > { %v1916_v10 = vpop.f32.mrf.mxu0 }
 0xed5   : > { %v1857_v11 = vpop.f32.mrf.mxu3 }
 0xed6   : > { %v1861_v12 = vmul.f32 0.35355338, %v1857_v11 }
 0xed8   : > { %v1862_v14 = vsel %vm1356_vm11, %v1861_v12, -inf }
 0xed9   : > { %1863 = vmax.xlane.f32.xlu0 %v1862_v14  ;;  %v2579_v14 = vld [vmem:[%s3424_s16 + $0x8] sm:$0xff] }
 0xeda   : > { %2111 = vmatpush.bf16.msra.mxu3 %v2579_v14 }
 0xedd   : > { %v1859_v15 = vpop.f32.mrf.mxu3 }
 0xede   : > { %v2578_v15 = vld [vmem:[%s3424_s16] sm:$0xff] }
 0xedf   : > { %2112 = vmatpush.bf16.msra.mxu3 %v2578_v15 }
 0xee5   : > { %v1971_v16 = vpop.f32.mrf.mxu3 }
 0xee6   : > { %v1975_v17 = vmul.f32 0.35355338, %v1971_v16 }
 0xee7   : > { %v2028_v18 = vpop.f32.mrf.mxu0 }
 0xee8   : > { %v2032_v19 = vmul.f32 0.35355338, %v2028_v18  ;;  %v1976_v20 = vsel %vm1356_vm11, %v1975_v17, -inf }
 0xee9   : > { %1977 = vmax.xlane.f32.xlu2 %v1976_v20 }
 0xeea   : > { %v2033_v21 = vsel %vm1356_vm11, %v2032_v19, -inf }
 0xeeb   : > { %2034 = vmax.xlane.f32.xlu0 %v2033_v21 }
 0xeed   : > { %v1973_v22 = vpop.f32.mrf.mxu3 }
 0xeef   : > { %v2030_v23 = vpop.f32.mrf.mxu0 }
 0xeff   : > { %1874 = vrot.lane.b32.xlu0 %v3242_v57, %s3420_s5  ;;  %s3427_s5 = smov 24  }
 0xf07   : > { %1988 = vrot.lane.b32.xlu0 %v3242_v57, %s3421_s3  ;;  %s3428_s3 = sld [smem:[#allocation20_spill]] }
 0xf0d   : > { %v2705_v23 = vld [vmem:[%s3428_s3] ss:$0 sm:$0xff]  ;;  %s1005_s3 = sand.u32 1, %s2824_s10  }
 0xf3d   : > { %v1921_v24 = vpop.xlane.xlu1 %1920 }
 0xf3e   : > { %v1922_v25 = vsub.f32 %v1918_v8, %v1921_v24 }
 0xf40   : > { %v1923_v26 = vmul.f32 1.442695, %v1922_v25 }
 0xf42   : > { %2748 = vpow2.f32 %v1923_v26 }
 0xf48   : > { %v2749_v13 = vpop.eup %2748 }
 0xf49   : > { %v1925_v27 = vsel %vm1356_vm11, %v2749_v13, 0.0 }
 0xf4a   : > { %1926 = vadd.xlane.f32.xlu2 %v1925_v27 }
 0xf4c   : > { %v1864_v28 = vpop.xlane.xlu0 %1863 }
 0xf4d   : > { %v1865_v29 = vsub.f32 %v1861_v12, %v1864_v28 }
 0xf4f   : > { %v1866_v30 = vmul.f32 1.442695, %v1865_v29 }
 0xf51   : > { %2750 = vpow2.f32 %v1866_v30 }
 0xf57   : > { %v2751_v31 = vpop.eup %2750 }
 0xf58   : > { %v1868_v32 = vsel %vm1356_vm11, %v2751_v31, 0.0 }
 0xf59   : > { %1869 = vadd.xlane.f32.xlu1 %v1868_v32 }
 0xf5c   : > { %v1978_v33 = vpop.xlane.xlu2 %1977 }
 0xf5d   : > { %v1979_v36 = vsub.f32 %v1975_v17, %v1978_v33 }
 0xf5e   : > { %v2035_v34 = vpop.xlane.xlu0 %2034 }
 0xf5f   : > { %v2036_v35 = vsub.f32 %v2032_v19, %v2035_v34  ;;  %v1980_v38 = vmul.f32 1.442695, %v1979_v36 }
 0xf61   : > { %v2037_v37 = vmul.f32 1.442695, %v2036_v35 }
 0xf63   : > { %2752 = vpow2.f32 %v2037_v37 }
 0xf64   : > { %2754 = vpow2.f32 %v1980_v38 }
 0xf69   : > { %v2753_v39 = vpop.eup %2752 }
 0xf6a   : > { %v2039_v40 = vsel %vm1356_vm11, %v2753_v39, 0.0  ;;  %v2755_v41 = vpop.eup %2754 }
 0xf6b   : > { %2040 = vadd.xlane.f32.xlu2 %v2039_v40  ;;  %v1982_v45 = vsel %vm1356_vm11, %v2755_v41, 0.0 }
 0xf71   : > { %v1875_v42 = vpop.permute.xlu0 %1874 }
 0xf72   : > { %v1880_v44 = vsel %vm1394_vm12, %v1875_v42, 0  ;;  %1931 = vrot.lane.b32.xlu1 %v3242_v57, %s3422_s8  ;;  %s3429_s8 = sld [smem:[#allocation23_spill]] }
 0xf73   : > { %1889 = vmatpush.bf16.msrb.mxu2 %v1880_v44  ;;  %1983 = vadd.xlane.f32.xlu2 %v1982_v45 }
 0xf78   : > { %v2581_v33 = vld [vmem:[%s3429_s8 + $0x8] sm:$0xff]  ;;  %v2580_v34 = vld [vmem:[%s3429_s8] sm:$0xff] }
 0xf79   : > { %v1989_v46 = vpop.permute.xlu0 %1988 }
 0xf7a   : > { %v1994_v47 = vsel %vm1394_vm12, %v1989_v46, 0 }
 0xf7b   : > { %2003 = vmatpush.bf16.msra.mxu2 %v1994_v47 }
 0xf8b   : > { %2045 = vrot.lane.b32.xlu2 %v3242_v57, %s3423_s26  ;;  %s3430_s26 = sld [smem:[#allocation21_spill]] }
 0xf91   : > { %v2706_v44 = vld [vmem:[%s3430_s26] ss:$0 sm:$0xff]  ;;  %s2396_s26 = sshll.u32 %s1005_s3, 3 }
 0xf92   : > { %s1007_s8 = scalar_lea.vmem [#allocation2], %s2396_s26 }
 0xf93   : > { %s2297_s9 = sshll.u32 %s1007_s8, 4  ;;  %s2298_s9 = int_to_ptr.vmem [resolvable:$true] %s2297_s9 }
 0xfbd   : > { %v1927_v51 = vpop.xlane.xlu2 %1926 }
 0xfcc   : > { %v1870_v48 = vpop.xlane.xlu1 %1869 }
 0xfcd   : > { %2756 = vrcp.f32 %v1870_v48 }
 0xfce   : > { %2758 = vrcp.f32 %v1927_v51 }
 0xfd3   : > { %v2757_v49 = vpop.eup %2756 }
 0xfd4   : > { %v1872_v50 = vmul.f32 %v2757_v49, %v2751_v31  ;;  %v2759_v55 = vpop.eup %2758 }
 0xfd5   : > { %v1929_v7 = vmul.f32 %v2759_v55, %v2749_v13 }
 0xfd6   : > { %v1873_v52 = vpack.c.bf16 %v1872_v50, %v1872_v50 }
 0xfd7   : > { %v1930_v60 = vpack.c.bf16 %v1929_v7, %v1929_v7 }
 0xfd8   : > { %2508 = vmatmul.msk.bf16.vlgmr.msrb.gmra.mxu2 %vm1356_vm11, %v1873_v52 }
 0xfd9   : > { %2181 = vmatpush.bf16.msrb.mxu2 %v2581_v33 }
 0xfdd   : > { %2182 = vmatpush.bf16.msrb.mxu2 %v2580_v34 }
 0xfde   : > { %v2041_v54 = vpop.xlane.xlu2 %2040 }
 0xfe4   : > { %v1932_v56 = vpop.permute.xlu1 %1931 }
 0xfe5   : > { %v1937_v58 = vsel %vm1394_vm12, %v1932_v56, 0 }
 0xfe6   : > { %v1984_v59 = vpop.xlane.xlu2 %1983  ;;  %1946 = vmatpush.bf16.msrb.mxu1 %v1937_v58 }
 0xfe7   : > { %2760 = vrcp.f32 %v1984_v59 }
 0xfe8   : > { %2762 = vrcp.f32 %v2041_v54 }
 0xfe9   : > { %2510 = vmatmul.msk.bf16.vlgmr.msrb.gmra.mxu1 %vm1356_vm11, %v1930_v60 }
 0xfed   : > { %v2761_v57 = vpop.eup %2760 }
 0xfee   : > { %v1986_v61 = vmul.f32 %v2761_v57, %v2755_v41  ;;  %v2046_v62 = vpop.permute.xlu2 %2045  ;;  %v2763_v0 = vpop.eup %2762 }
 0xfef   : > { %v2051_v63 = vsel %vm1394_vm12, %v2046_v62, 0  ;;  %v2043_v2 = vmul.f32 %v2763_v0, %v2753_v39 }
 0xff0   : > { %v1987_v1 = vpack.c.bf16 %v1986_v61, %v1986_v61  ;;  %2060 = vmatpush.bf16.msra.mxu1 %v2051_v63 }
 0xff1   : > { %v2044_v3 = vpack.c.bf16 %v2043_v2, %v2043_v2 }
 0xff2   : > { %2512 = vmatmul.msk.bf16.vlgmr.msra.gmra.mxu2 %vm1356_vm11, %v1987_v1 }
 0xff9   : > { %2514 = vmatmul.msk.bf16.vlgmr.msra.gmra.mxu1 %vm1356_vm11, %v2044_v3 }
0x105b   : > { %v1891_v4 = vpop.f32.mrf.mxu2 }
0x1063   : > { %v1893_v5 = vpop.f32.mrf.mxu2 }
0x1064   : > { %v2709_v5 = vld [vmem:[%s3434_s12] ss:$0 sm:$0xff] }
0x1066   : > { %v1948_v6 = vpop.f32.mrf.mxu1 }
0x1067   : > { %2067 = vrot.lane.b32.xlu1 %v1948_v6, %s3425_s2  ;;  %s3431_s2 = sld [smem:[#allocation22_spill]] }
0x106d   : > { %v2707_v46 = vld [vmem:[%s3431_s2] ss:$0 sm:$0xff]  ;;  %s2551_s2 = sshll.u32 %s3081_s0, 3  ;;  %s2285_s0 = scalar_lea.sflag [#allocation3], %s1005_s3 }
0x106e   : > { %v1950_v8 = vpop.f32.mrf.mxu1 }
0x1075   : > { %v2005_v9 = vpop.f32.mrf.mxu2 }
0x1076   : > { %2071 = vrot.lane.b32.xlu0 %v2005_v9, %s3426_s22  ;;  %v2062_v10 = vpop.f32.mrf.mxu1  ;;  %s3432_s22 = sld [smem:[#allocation25_spill]] }
0x1077   : > { %2075 = vrot.lane.b32.xlu1 %v2062_v10, %s3427_s5  ;;  %s3433_s5 = sld [smem:[#allocation24_spill]] }
0x107c   : > { %v2585_v51 = vld [vmem:[%s3432_s22 + $0x18] sm:$0xff]  ;;  %v2584_v52 = vld [vmem:[%s3432_s22 + $0x10] sm:$0xff]  ;;  %v2583_v54 = vld [vmem:[%s3432_s22 + $0x8] sm:$0xff] }
0x107d   : > { %v2007_v11 = vpop.f32.mrf.mxu2  ;;  %2241 = vmatpush.bf16.msrb.mxu0 %v2585_v51  ;;  %v2582_v55 = vld [vmem:[%s3432_s22] sm:$0xff] }
0x107e   : > { %v2064_v12 = vpop.f32.mrf.mxu1  ;;  %v2708_v7 = vld [vmem:[%s3433_s5] ss:$0 sm:$0xff]  ;;  %s2295_s5 = scalar_lea.hbm %s3058_s4, %s2551_s2  ;;  %s2790_s2 = scalar_lea.hbm %s3058_s4, 16 }
0x107f   : > { %s2299_s12 = sshll.u32 %s2295_s5, 4  ;;  %s2300_s12 = int_to_ptr.hbm [resolvable:$true] %s2299_s12 }
0x1080   : > { %s2784_s13 = sshra.s32 %s2300_s12, 4  ;;  %s2785_s13 = int_to_ptr.hbm [resolvable:$true] %s2784_s13 }
0x1081   : > { %2242 = vmatpush.bf16.msrb.mxu0 %v2584_v52  ;;  %p2791_p0 = scmp.lt.s32.totalorder %s2785_s13, %s3058_s4 }
0x1085   : > { %2243 = vmatpush.bf16.msrb.mxu0 %v2583_v54 }
0x1089   : > { %2244 = vmatpush.bf16.msrb.mxu0 %v2582_v55 }
0x10d9   : > { %v2068_v16 = vpop.permute.xlu1 %2067 }
0x10da   : > { %v2078_v17 = vsel %vm1356_vm11, %v1891_v4, %v2068_v16 }
0x10e8   : > { %v2072_v18 = vpop.permute.xlu0 %2071 }
0x10e9   : > { %v2079_v19 = vsel %vm1595_vm13, %v2078_v17, %v2072_v18  ;;  %v2076_v20 = vpop.permute.xlu1 %2075 }
0x10ea   : > { %v2080_v21 = vsel %vm1597_vm14, %v2079_v19, %v2076_v20 }
0x10eb   : > { %v2081_v22 = vpack.c.bf16 %v2080_v21, %v2080_v21 }
0x10ed   : > { %2523 = vmatmul.msk.bf16.vlgmr.msra.gmra.mxu3 %vm1133_vm4, %v2081_v22 }
0x1170   : > { %v2114_v24 = vpop.f32.mrf.mxu3 }
0x1171   : > { %v2115_v25 = vadd.f32 %v2705_v23, %v2114_v24 }
0x1173   : > { %v2118_v26 = vadd.f32 %v2115_v25, %v3236_v53 }
0x1175   : > { %v2121_v13 = vsel %vm1133_vm4, %v2118_v26, 0.0 }
0x1176   : > { %2122 = vadd.xlane.f32.xlu0 %v2121_v13  ;;  %v2710_v13 = vld [vmem:[%s3435_s6] ss:$0 sm:$0xff]  ;;  %s2786_s6 = scalar_lea.hbm %s2785_s13, 8 }
0x1177   : > { %p2787_p11 = scmp.ne.s32.totalorder %s2785_s13, %s2786_s6  ;;  %p2792_p1 = scmp.lt.s32.totalorder %s2790_s2, %s2786_s6 }
0x1178   : > { %v2116_v27 = vpop.f32.mrf.mxu3 }
0x1179   : > { %p2788_p12 = pnand %p2787_p11, %p3098_p5  ;;  %p2793_p2 = por %p2792_p1, %p2791_p0 }
0x117b   : > { %p2789_p13 = pneg %p2788_p12 }
0x117d   : > { %p2794_p3 = pnand %p2793_p2, %p2789_p13 }
0x11e9   : > { %v2123_v28 = vpop.xlane.xlu0 %2122 }
0x11ea   : > { %v2124_v29 = vmul.f32 %v2123_v28, %v3130_v43  ;;  %v2711_v28 = vld [vmem:[%s3053_s27] ss:$0 sm:$0xff] }
0x11ec   : > { %v2125_v30 = vsub.f32 %v2118_v26, %v2124_v29 }
0x11ee   : > { %v2126_v31 = vmul.f32 %v2125_v30, %v2125_v30 }
0x11f0   : > { %v2127_v32 = vsel %vm1133_vm4, %v2126_v31, 0.0 }
0x11f1   : > { %2128 = vadd.xlane.f32.xlu1 %v2127_v32 }
0x1264   : > { %v2129_v35 = vpop.xlane.xlu1 %2128 }
0x1265   : > { %v2130_v53 = vmul.f32 %v2129_v35, %v3130_v43 }
0x1267   : > { %v2131_v36 = vadd.f32 1e-05, %v2130_v53 }
0x1269   : > { %2764 = vrsqrt.f32 %v2131_v36  ;;  %vm2138_vm8 = vweird.f32 %v2131_v36 }
0x126f   : > { %v2765_v37 = vpop.eup %2764 }
0x1270   : > { %v2133_v38 = vmul.f32 %v2765_v37, %v2131_v36  ;;  %vm2139_vm7 = vweird.f32 %v2765_v37 }
0x1271   : > { %vm2140_vm9 = vmor %vm2138_vm8, %vm2139_vm7 }
0x1272   : > { %v2134_v39 = vmul.f32 %v2765_v37, %v2133_v38 }
0x1274   : > { %v2135_v40 = vmul.f32 0.5, %v2134_v39 }
0x1276   : > { %v2136_v41 = vsub.f32 1.5, %v2135_v40 }
0x1278   : > { %v2137_v42 = vmul.f32 %v2765_v37, %v2136_v41 }
0x127a   : > { %v2141_v45 = vsel %vm2140_vm9, %v2765_v37, %v2137_v42 }
0x127b   : > { %v2142_v47 = vmul.f32 %v2141_v45, %v2125_v30 }
0x127d   : > { %v2146_v48 = vmul.f32 %v2706_v44, %v2142_v47 }
0x127f   : > { %v2150_v49 = vadd.f32 %v2707_v46, %v2146_v48 }
0x1281   : > { %v2151_v50 = vpack.c.bf16 %v2150_v49, %v2150_v49 }
0x1283   : > { %2532 = vmatmul.msk.bf16.vlgmr.msrb.gmra.mxu2 %vm1133_vm4, %v2151_v50 }
0x1306   : > { %v2184_v56 = vpop.f32.mrf.mxu2 }
0x1307   : > { %v2185_v58 = vadd.f32 %v2708_v7, %v2184_v56 }
0x1309   : > { %v2189_v59 = vmul.f32 0.044715, %v2185_v58  ;;  %v2188_v1 = vmul.f32 0.5, %v2185_v58 }
0x130b   : > { %v2190_v60 = vmul.f32 %v2189_v59, %v2185_v58 }
0x130d   : > { %v2191_v57 = vmul.f32 %v2190_v60, %v2185_v58 }
0x130e   : > { %v2186_v61 = vpop.f32.mrf.mxu2 }
0x130f   : > { %v2192_v62 = vadd.f32 %v2191_v57, %v2185_v58 }
0x1311   : > { %v2193_v63 = vmul.f32 0.7978846, %v2192_v62 }
0x1313   : > { %2766 = vtanh.f32 %v2193_v63 }
0x1319   : > { %v2767_v0 = vpop.eup %2766 }
0x131a   : > { %v2195_v2 = vadd.f32 1.0, %v2767_v0 }
0x131c   : > { %v2196_v3 = vmul.f32 %v2195_v2, %v2188_v1 }
0x131e   : > { %v2197_v4 = vpack.c.bf16 %v2196_v3, %v2196_v3 }
0x1320   : > { %2549 = vmatmul.msk.bf16.vlgmr.msrb.gmra.mxu0 %vm1144_vm5, %v2197_v4 }
0x139d   : > { %v2246_v6 = vpop.f32.mrf.mxu0 }
0x139e   : > { %v2247_v8 = vadd.f32 %v2709_v5, %v2246_v6 }
0x13a0   : > { %v2250_v9 = vadd.f32 %v2247_v8, %v2150_v49 }
0x13a2   : > { %v2253_v10 = vsel %vm1133_vm4, %v2250_v9, 0.0 }
0x13a3   : > { %2254 = vadd.xlane.f32.xlu2 %v2253_v10 }
0x13a5   : > { %v2248_v11 = vpop.f32.mrf.mxu0 }
0x1416   : > { %v2255_v12 = vpop.xlane.xlu2 %2254 }
0x1417   : > { %v2256_v14 = vmul.f32 %v2255_v12, %v3130_v43 }
0x1419   : > { %v2257_v15 = vsub.f32 %v2250_v9, %v2256_v14 }
0x141b   : > { %v2258_v16 = vmul.f32 %v2257_v15, %v2257_v15 }
0x141d   : > { %v2259_v17 = vsel %vm1133_vm4, %v2258_v16, 0.0 }
0x141e   : > { %2260 = vadd.xlane.f32.xlu0 %v2259_v17 }
0x1491   : > { %v2261_v18 = vpop.xlane.xlu0 %2260 }
0x1492   : > { %v2262_v19 = vmul.f32 %v2261_v18, %v3130_v43 }
0x1494   : > { %v2263_v20 = vadd.f32 1e-05, %v2262_v19 }
0x1496   : > { %2768 = vrsqrt.f32 %v2263_v20  ;;  %vm2270_vm10 = vweird.f32 %v2263_v20 }
0x149c   : > { %v2769_v21 = vpop.eup %2768 }
0x149d   : > { %v2265_v22 = vmul.f32 %v2769_v21, %v2263_v20  ;;  %vm2271_vm5 = vweird.f32 %v2769_v21 }
0x149e   : > { %vm2272_vm11 = vmor %vm2270_vm10, %vm2271_vm5 }
0x149f   : > { %v2266_v23 = vmul.f32 %v2769_v21, %v2265_v22 }
0x14a1   : > { %v2267_v24 = vmul.f32 0.5, %v2266_v23 }
0x14a3   : > { %v2268_v25 = vsub.f32 1.5, %v2267_v24 }
0x14a5   : > { %v2269_v26 = vmul.f32 %v2769_v21, %v2268_v25 }
0x14a7   : > { %v2273_v27 = vsel %vm2272_vm11, %v2769_v21, %v2269_v26 }
0x14a8   : > { %v2274_v43 = vmul.f32 %v2273_v27, %v2257_v15 }
0x14aa   : > { %v2278_v29 = vmul.f32 %v2710_v13, %v2274_v43 }
0x14ac   : > { %v2282_v30 = vadd.f32 %v2711_v28, %v2278_v29 }
0x14ae   : > { %2283 = vst.msk [vmem:[%s1007_s8] sm:$0xff] %vm1133_vm4, %v2282_v30 }
0x14af   : > { %2797 = shalt.err (!%p2794_p3)
}
0x14b0   : > { %2586 = dma.vmem_to_hbm [thread:$0]  (%p3098_p5), %s2298_s9, 128, %s2300_s12, %s2285_s0  }
0x14b1 PF: > { %p2592_p4 = scmp.ge.s32.totalorder %s2832_s15, 2  ;;  %s2311_s8 = sand.u32 1, %s2820_s7  }
0x14b2   : > { %s2312_s3 = scalar_lea.sflag [#allocation3], %s2311_s8 }
0x14b3   : > { %p2589_p7 = pnand %p2592_p4, %p3102_p6 }
0x14b5   : > { %p2590_p8 = pneg %p2589_p7 }
0x14b7   : > { %2815 = dma.done.wait (%p2590_p8), %s2312_s3, 128  }
0x14b8   : > { %2817 = vsyncadd (%p2590_p8), %s2312_s3, 4294967168  ;;  %s3436_s13 = sld [smem:[#allocation28_spill]]  ;;  %p77_p9 = scmp.ge.s32.totalorder %s3085_s18, 4  }
0x14b9   : > { %s3437_s7 = smov %s2824_s10  ;;  %s3438_s10 = smov %s2828_s11 }
0x14ba   : > { %s3440_s15 = smov %s3085_s18  ;;  %79 = sbr.rel (!%p77_p9) target bundleno = 65 (0x41), region = 220 }
0x14be   : > { %s3439_s11 = smov %s3436_s13 }
0x14bf   :  { %2318 = vsyncpa [#allocation3], 1 }
0x14c0   :  { %2320 = vsyncpa [#allocation3 + $0x1], 1 }

</bundles_post_ra>
